<compile_context>
chip_gen: v7x
topology: tpu7x:2x2x1
jax: 0.10.0
libtpu: 0.0.40
codegen_flags: <defaults>
</compile_context>

<pallas_src>
import math

import jax
import jax.numpy as jnp
from jax import lax
from jax.experimental import pallas as pl
from jax.experimental.pallas import tpu as pltpu


# ----------------------------------------------------------------------------
# helpers
# ----------------------------------------------------------------------------
def _round_up(x, m):
    return ((x + m - 1) // m) * m


def _pick_time_chunk(T, B, max_chunk=128):
    """Largest Tc <= max_chunk dividing T with (Tc*B) % 8 == 0 (or Tc == T)."""
    for cand in range(min(T, max_chunk), 0, -1):
        if T % cand == 0 and ((cand * B) % 8 == 0 or cand == T):
            return cand
    return T


def _window_features(x_tm, window, backward):
    """x_tm: (T, B, D) -> (T, B, window*D), stored in ORIGINAL time order.

    Forward:  slab j at time t is x[t - (window-1) + j]   (causal window).
    Backward: slab j at time t is x[t + (window-1) - j]   (== windows of the
              time-reversed sequence, re-indexed back to original time).
    Out-of-range timesteps are zero (matches zero padding of the causal conv).
    """
    T = x_tm.shape[0]
    slabs = []
    for j in range(window):
        off = (j - (window - 1)) if not backward else ((window - 1) - j)
        if off == 0:
            sl = x_tm
        elif off < 0:
            sl = jnp.pad(x_tm, ((-off, 0), (0, 0), (0, 0)))[:T]
        else:
            sl = jnp.pad(x_tm, ((0, off), (0, 0), (0, 0)))[off:off + T]
        slabs.append(sl)
    return jnp.concatenate(slabs, axis=-1)


# ----------------------------------------------------------------------------
# Pallas kernel: one time-chunk of one direction (grid = (2 directions, chunks)).
#   xw_ref : (R, K)      windowed input rows, R = Tc*B (time-major, batch-minor), bf16
#   w_ref  : (K, 3*Hp)   gate weights [z | f | o], each gate padded to Hp lanes, bf16
#   b_ref  : (1, 3*Hp)   gate bias, f32
#   h_ref  : (R, Hp)     output hidden states, f32
#   c_carry: (B, Hp)     VMEM scratch, carry across time-chunks
#   a_buf  : (2*PAD+R, Hp)  VMEM scratch, scan coefficient a = f
#   b_buf  : (2*PAD+R, Hp)  VMEM scratch, scan offset b = (1-f)*z  (becomes c)
# ----------------------------------------------------------------------------
def _make_bi_qq_kernel(Tc, B, PAD, shifts):
    R = Tc * B

    def kernel(xw_ref, w_ref, b_ref, h_ref, c_carry, a_buf, b_buf):
        d = pl.program_id(0)          # 0 = forward, 1 = backward
        i = pl.program_id(1)          # time-chunk step within this direction
        Hp = h_ref.shape[-1]

        # per-direction init: zero the carry, identity values in the scan pads.
        @pl.when(i == 0)
        def _init():
            c_carry[...] = jnp.zeros(c_carry.shape, jnp.float32)
            a_buf[...] = jnp.ones(a_buf.shape, jnp.float32)    # mult. identity
            b_buf[...] = jnp.zeros(b_buf.shape, jnp.float32)   # add. identity

        # ---- hoisted gate matmul: one MXU matmul per chunk (bf16 in, f32 acc) ----
        g = jnp.dot(xw_ref[...], w_ref[...],
                    preferred_element_type=jnp.float32) + b_ref[...]
        z = jnp.tanh(g[:, 0 * Hp:1 * Hp])
        f = jax.nn.sigmoid(g[:, 1 * Hp:2 * Hp])
        o = jax.nn.sigmoid(g[:, 2 * Hp:3 * Hp])

        # fo-pooling as a first-order linear recurrence over rows with lag B:
        #   c_r = a_r * c_{r -/+ B} + b_r,  a = f, b = (1-f)*z
        a_buf[pl.ds(PAD, R)] = f
        b_buf[pl.ds(PAD, R)] = (1.0 - f) * z

        # fold the incoming chunk carry into the first-processed timestep's rows
        # (local t = 0 for forward, local t = Tc-1 for backward).
        fold_start = PAD + (R - B) * d
        carry = c_carry[...]
        b_buf[pl.ds(fold_start, B)] = (b_buf[pl.ds(fold_start, B)]
                                       + a_buf[pl.ds(fold_start, B)] * carry)

        # ---- Hillis-Steele parallel scan: log2(Tc) vectorized passes ----
        # shift direction flips for the backward pass via a dynamic slice start.
        sign = 1 - 2 * d                      # +1 forward, -1 backward
        for s in shifts:                      # static python unroll: s = B, 2B, 4B, ...
            cur_a = a_buf[pl.ds(PAD, R)]
            cur_b = b_buf[pl.ds(PAD, R)]
            prev_start = PAD - s * sign
            prv_a = a_buf[pl.ds(prev_start, R)]
            prv_b = b_buf[pl.ds(prev_start, R)]
            a_buf[pl.ds(PAD, R)] = cur_a * prv_a
            b_buf[pl.ds(PAD, R)] = cur_a * prv_b + cur_b

        c_all = b_buf[pl.ds(PAD, R)]
        h_ref[...] = (o * c_all).astype(h_ref.dtype)

        # carry out = c at the last-processed timestep of this chunk.
        carry_start = PAD + (R - B) * (1 - d)
        c_carry[...] = b_buf[pl.ds(carry_start, B)]

    return kernel


# ----------------------------------------------------------------------------
# One bidirectional quasi-LSTM layer (single pallas_call for both directions).
# ----------------------------------------------------------------------------
def bi_qq_layer(x_tm, w_all, b_all, window, hidden, hidden_pad, time_chunk):
    """x_tm: (T, B, D) f32 time-major -> (T, B, 2*hidden) f32."""
    T, B, D = x_tm.shape
    K = window * D
    Hp = hidden_pad
    Tc = time_chunk
    assert T % Tc == 0, (T, Tc)
    nc = T // Tc
    R = Tc * B

    # windowed inputs for both directions, in ORIGINAL time order, bf16 for the MXU.
    xw_f = _window_features(x_tm, window, backward=False)
    xw_b = _window_features(x_tm, window, backward=True)
    xw = jnp.stack([xw_f, xw_b], axis=0).reshape(2, T * B, K).astype(jnp.bfloat16)

    nsteps = int(math.ceil(math.log2(Tc))) if Tc > 1 else 0
    shifts = [B * (1 << k) for k in range(nsteps)]
    max_shift = shifts[-1] if shifts else 0
    PAD = _round_up(max(max_shift, 8), 8)

    kernel = _make_bi_qq_kernel(Tc, B, PAD, shifts)

    def io_map(d, i):
        # backward direction visits time-chunks in reverse order (reversal in the
        # index_map, not via host-side flips).
        return (d, i + d * (nc - 1 - 2 * i), 0)

    h = pl.pallas_call(
        kernel,
        out_shape=jax.ShapeDtypeStruct((2, T * B, Hp), jnp.float32),
        grid=(2, nc),
        in_specs=[
            pl.BlockSpec((None, R, K), io_map),
            pl.BlockSpec((None, K, 3 * Hp), lambda d, i: (d, 0, 0)),
            pl.BlockSpec((None, 1, 3 * Hp), lambda d, i: (d, 0, 0)),
        ],
        out_specs=pl.BlockSpec((None, R, Hp), io_map),
        scratch_shapes=[
            pltpu.VMEM((B, Hp), jnp.float32),              # cross-chunk carry c
            pltpu.VMEM((2 * PAD + R, Hp), jnp.float32),    # scan buffer: a (= f)
            pltpu.VMEM((2 * PAD + R, Hp), jnp.float32),    # scan buffer: b (-> c)
        ],
        compiler_params=pltpu.CompilerParams(
            dimension_semantics=("parallel", "arbitrary"),
            vmem_limit_bytes=48 * 1024 * 1024,   # sized for v7x's 64 MiB VMEM
        ),
    )(xw, w_all, b_all)

    h = h.reshape(2, T, B, Hp)[:, :, :, :hidden]            # drop lane padding
    return jnp.concatenate([h[0], h[1]], axis=-1)            # (T, B, 2H)


def biqqlstm_forward(x, packed_params, window, hidden, hidden_pad):
    """x: (B, T, D) -> (B, T, 2*hidden)."""
    x_tm = jnp.transpose(x, (1, 0, 2))                       # time-major once
    T, B, _ = x_tm.shape
    Tc = _pick_time_chunk(T, B)
    out = x_tm
    for (w_all, b_all) in packed_params:
        out = bi_qq_layer(out, w_all, b_all, window, hidden, hidden_pad, Tc)
        # TODO(synk): lstm_dropout between layers is a training-time op; forward
        #             here is inference-mode (dropout == identity).
    return jnp.transpose(out, (1, 0, 2))


# ----------------------------------------------------------------------------
# Parameter construction (synthetic, matching the module's shapes) + packing
# into the kernel layout: gates padded to Hp lanes, directions stacked.
# ----------------------------------------------------------------------------
def init_params(key, input_dim, hidden, num_layers, window):
    raw = []
    d = input_dim
    for _ in range(num_layers):
        K = window * d
        scale = 1.0 / math.sqrt(K)
        key, k1, k2, k3, k4 = jax.random.split(key, 5)
        Wf = jax.random.uniform(k1, (K, 3 * hidden), jnp.float32, -scale, scale)
        bf = jax.random.uniform(k2, (3 * hidden,), jnp.float32, -scale, scale)
        Wb = jax.random.uniform(k3, (K, 3 * hidden), jnp.float32, -scale, scale)
        bb = jax.random.uniform(k4, (3 * hidden,), jnp.float32, -scale, scale)
        raw.append((Wf, bf, Wb, bb))
        d = 2 * hidden   # next layer consumes concatenated bidirectional output
    return raw


def pack_params(raw, hidden, hidden_pad):
    packed = []
    for Wf, bf, Wb, bb in raw:
        K = Wf.shape[0]

        def pack_w(W):
            out = jnp.zeros((K, 3 * hidden_pad), jnp.float32)
            for g in range(3):
                out = out.at[:, g * hidden_pad:g * hidden_pad + hidden].set(
                    W[:, g * hidden:(g + 1) * hidden])
            return out.astype(jnp.bfloat16)

        def pack_b(b):
            out = jnp.zeros((3 * hidden_pad,), jnp.float32)
            for g in range(3):
                out = out.at[g * hidden_pad:g * hidden_pad + hidden].set(
                    b[g * hidden:(g + 1) * hidden])
            return out.reshape(1, 3 * hidden_pad)

        w_all = jnp.stack([pack_w(Wf), pack_w(Wb)], axis=0)   # (2, K, 3Hp) bf16
        b_all = jnp.stack([pack_b(bf), pack_b(bb)], axis=0)   # (2, 1, 3Hp) f32
        packed.append((w_all, b_all))
    return packed


# ----------------------------------------------------------------------------
# Pure-JAX reference (lax.scan) for correctness checking.
# ----------------------------------------------------------------------------
def _reference_direction(xw, W, b, hidden, reverse):
    T, B, K = xw.shape
    g = jnp.dot(xw.reshape(T * B, K).astype(jnp.bfloat16), W.astype(jnp.bfloat16),
                preferred_element_type=jnp.float32).reshape(T, B, 3 * hidden) + b
    z = jnp.tanh(g[..., :hidden])
    f = jax.nn.sigmoid(g[..., hidden:2 * hidden])
    o = jax.nn.sigmoid(g[..., 2 * hidden:])

    def step(c, fzo):
        f_t, z_t, o_t = fzo
        c = f_t * c + (1.0 - f_t) * z_t
        return c, o_t * c

    _, h = lax.scan(step, jnp.zeros((B, hidden), jnp.float32), (f, z, o),
                    reverse=reverse)
    return h


def reference_forward(x, raw_params, window, hidden):
    x_tm = jnp.transpose(x, (1, 0, 2))
    for Wf, bf, Wb, bb in raw_params:
        xw_f = _window_features(x_tm, window, backward=False)
        xw_b = _window_features(x_tm, window, backward=True)
        h_f = _reference_direction(xw_f, Wf, bf, hidden, reverse=False)
        h_b = _reference_direction(xw_b, Wb, bb, hidden, reverse=True)
        x_tm = jnp.concatenate([h_f, h_b], axis=-1)
    return jnp.transpose(x_tm, (1, 0, 2))


# ----------------------------------------------------------------------------
if __name__ == "__main__":
    # hyperparameters implied by the module's __init__
    input_dim = 16      # args['inputDim']
    hidden = 32         # args['lstm_out']
    num_layers = 2      # args['lstm_layers']
    window = 3          # args['window_size']
    batch, seq = 2, 8
    hidden_pad = _round_up(hidden, 128)

    key = jax.random.PRNGKey(0)
    k_x, k_p = jax.random.split(key)
    x = jax.random.normal(k_x, (batch, seq, input_dim), dtype=jnp.float32)
    raw = init_params(k_p, input_dim, hidden, num_layers, window)
    packed = pack_params(raw, hidden, hidden_pad)

    fwd = jax.jit(lambda xx: biqqlstm_forward(xx, packed, window, hidden, hidden_pad))
    out = fwd(x)
    jax.block_until_ready(out)

    assert out.shape == (batch, seq, 2 * hidden), out.shape
    assert bool(jnp.all(jnp.isfinite(out)))

    ref = reference_forward(x, raw, window, hidden)
    err = float(jnp.max(jnp.abs(out - ref)))
    assert err < 5e-2, f"max abs diff vs reference = {err}"
    print("KERNEL_OK")
</pallas_src>

<mosaic_0001>
module attributes {stable_mosaic.version = 11 : i64} {
  func.func @kernel(%arg0: i32, %arg1: i32, %arg2: memref<1x16x48xbf16, #tpu.memory_space<vmem>>, %arg3: memref<1x48x384xbf16, #tpu.memory_space<vmem>>, %arg4: memref<1x1x384xf32, #tpu.memory_space<vmem>>, %arg5: memref<1x16x128xf32, #tpu.memory_space<vmem>>, %arg6: memref<2x128xf32, #tpu.memory_space<vmem>>, %arg7: memref<32x128xf32, #tpu.memory_space<vmem>>, %arg8: memref<32x128xf32, #tpu.memory_space<vmem>>) attributes {dimension_semantics = [#tpu.dimension_semantics<parallel>, #tpu.dimension_semantics<arbitrary>], iteration_bounds = array<i64: 2, 1>, scalar_prefetch = 0 : i64, scratch_operands = 3 : i64, tpu.core_type = #tpu.core_type<tc>, window_params = [{transform_indices = @transform_0, window_bounds = array<i64: 1, 16, 48>}, {transform_indices = @transform_1, window_bounds = array<i64: 1, 48, 384>}, {transform_indices = @transform_2, window_bounds = array<i64: 1, 1, 384>}, {transform_indices = @transform_3, window_bounds = array<i64: 1, 16, 128>}]} {
    %c0_i32 = arith.constant 0 : i32
    %0 = arith.cmpi eq, %arg1, %c0_i32 : i32
    %1 = arith.extui %0 : i1 to i32
    %c0_i32_0 = arith.constant 0 : i32
    %2 = arith.cmpi ne, %1, %c0_i32_0 : i32
    scf.if %2 {
      %cst_66 = arith.constant 0.000000e+00 : f32
      %94 = vector.broadcast %cst_66 : f32 to vector<2x128xf32>
      %c0_67 = arith.constant 0 : index
      %c0_68 = arith.constant 0 : index
      %95 = vector.load %arg6[%c0_67, %c0_68] : memref<2x128xf32, #tpu.memory_space<vmem>>, vector<2x128xf32>
      tpu.vector_store %arg6[%c0_67, %c0_68], %94 {strides = array<i32>} : memref<2x128xf32, #tpu.memory_space<vmem>>, vector<2x128xf32>,
      %cst_69 = arith.constant 1.000000e+00 : f32
      %96 = vector.broadcast %cst_69 : f32 to vector<32x128xf32>
      %c0_70 = arith.constant 0 : index
      %c0_71 = arith.constant 0 : index
      %97 = vector.load %arg7[%c0_70, %c0_71] : memref<32x128xf32, #tpu.memory_space<vmem>>, vector<32x128xf32>
      tpu.vector_store %arg7[%c0_70, %c0_71], %96 {strides = array<i32>} : memref<32x128xf32, #tpu.memory_space<vmem>>, vector<32x128xf32>,
      %cst_72 = arith.constant 0.000000e+00 : f32
      %98 = vector.broadcast %cst_72 : f32 to vector<32x128xf32>
      %c0_73 = arith.constant 0 : index
      %c0_74 = arith.constant 0 : index
      %99 = vector.load %arg8[%c0_73, %c0_74] : memref<32x128xf32, #tpu.memory_space<vmem>>, vector<32x128xf32>
      tpu.vector_store %arg8[%c0_73, %c0_74], %98 {strides = array<i32>} : memref<32x128xf32, #tpu.memory_space<vmem>>, vector<32x128xf32>,
    } else {
    }
    %c0 = arith.constant 0 : index
    %c0_1 = arith.constant 0 : index
    %c0_2 = arith.constant 0 : index
    %3 = vector.load %arg2[%c0, %c0_1, %c0_2] : memref<1x16x48xbf16, #tpu.memory_space<vmem>>, vector<1x16x48xbf16>
    %4 = vector.shape_cast %3 : vector<1x16x48xbf16> to vector<16x48xbf16>
    %c0_3 = arith.constant 0 : index
    %c0_4 = arith.constant 0 : index
    %c0_5 = arith.constant 0 : index
    %5 = vector.load %arg3[%c0_3, %c0_4, %c0_5] : memref<1x48x384xbf16, #tpu.memory_space<vmem>>, vector<1x48x384xbf16>
    %6 = vector.shape_cast %5 : vector<1x48x384xbf16> to vector<48x384xbf16>
    %cst = arith.constant dense<0.000000e+00> : vector<16x384xf32>
    %7 = tpu.matmul %4, %6, %cst {dimension_numbers = #tpu.dot_dimension_numbers<[1], [0], [0], [1], [0, 0, 1, 1], [], []>} : vector<16x48xbf16>, vector<48x384xbf16>, vector<16x384xf32> -> vector<16x384xf32>
    %c0_6 = arith.constant 0 : index
    %c0_7 = arith.constant 0 : index
    %c0_8 = arith.constant 0 : index
    %8 = vector.load %arg4[%c0_6, %c0_7, %c0_8] : memref<1x1x384xf32, #tpu.memory_space<vmem>>, vector<1x1x384xf32>
    %9 = vector.shape_cast %8 : vector<1x1x384xf32> to vector<1x384xf32>
    %10 = vector.broadcast %9 : vector<1x384xf32> to vector<16x384xf32>
    %11 = arith.addf %7, %10 : vector<16x384xf32>
    %12 = vector.extract_strided_slice %11 {offsets = [0, 0], sizes = [16, 128], strides = [1, 1]} : vector<16x384xf32> to vector<16x128xf32>
    %13 = math.tanh %12 : vector<16x128xf32>
    %14 = vector.extract_strided_slice %11 {offsets = [0, 128], sizes = [16, 128], strides = [1, 1]} : vector<16x384xf32> to vector<16x128xf32>
    %15 = arith.negf %14 : vector<16x128xf32>
    %16 = math.exp %15 : vector<16x128xf32>
    %cst_9 = arith.constant 1.000000e+00 : f32
    %17 = vector.broadcast %cst_9 : f32 to vector<16x128xf32>
    %18 = arith.addf %17, %16 : vector<16x128xf32>
    %19 = arith.divf %17, %18 : vector<16x128xf32>
    %20 = vector.extract_strided_slice %11 {offsets = [0, 256], sizes = [16, 128], strides = [1, 1]} : vector<16x384xf32> to vector<16x128xf32>
    %21 = arith.negf %20 : vector<16x128xf32>
    %22 = math.exp %21 : vector<16x128xf32>
    %cst_10 = arith.constant 1.000000e+00 : f32
    %23 = vector.broadcast %cst_10 : f32 to vector<16x128xf32>
    %24 = arith.addf %23, %22 : vector<16x128xf32>
    %25 = arith.divf %23, %24 : vector<16x128xf32>
    %c8 = arith.constant 8 : index
    %c0_11 = arith.constant 0 : index
    %26 = vector.load %arg7[%c8, %c0_11] : memref<32x128xf32, #tpu.memory_space<vmem>>, vector<16x128xf32>
    tpu.vector_store %arg7[%c8, %c0_11], %19 {strides = array<i32>} : memref<32x128xf32, #tpu.memory_space<vmem>>, vector<16x128xf32>,
    %cst_12 = arith.constant 1.000000e+00 : f32
    %27 = vector.broadcast %cst_12 : f32 to vector<16x128xf32>
    %28 = arith.subf %27, %19 : vector<16x128xf32>
    %29 = arith.mulf %28, %13 : vector<16x128xf32>
    %c8_13 = arith.constant 8 : index
    %c0_14 = arith.constant 0 : index
    %30 = vector.load %arg8[%c8_13, %c0_14] : memref<32x128xf32, #tpu.memory_space<vmem>>, vector<16x128xf32>
    tpu.vector_store %arg8[%c8_13, %c0_14], %29 {strides = array<i32>} : memref<32x128xf32, #tpu.memory_space<vmem>>, vector<16x128xf32>,
    %c14_i32 = arith.constant 14 : i32
    %31 = arith.muli %c14_i32, %arg0 : i32
    %c8_i32 = arith.constant 8 : i32
    %32 = arith.addi %c8_i32, %31 : i32
    %c0_15 = arith.constant 0 : index
    %c0_16 = arith.constant 0 : index
    %33 = vector.load %arg6[%c0_15, %c0_16] : memref<2x128xf32, #tpu.memory_space<vmem>>, vector<2x128xf32>
    %34 = arith.index_cast %32 : i32 to index
    %c0_17 = arith.constant 0 : index
    %35 = vector.load %arg8[%34, %c0_17] : memref<32x128xf32, #tpu.memory_space<vmem>>, vector<2x128xf32>
    %36 = arith.index_cast %32 : i32 to index
    %c0_18 = arith.constant 0 : index
    %37 = vector.load %arg7[%36, %c0_18] : memref<32x128xf32, #tpu.memory_space<vmem>>, vector<2x128xf32>
    %38 = arith.mulf %37, %33 : vector<2x128xf32>
    %39 = arith.addf %35, %38 : vector<2x128xf32>
    %40 = arith.index_cast %32 : i32 to index
    %c0_19 = arith.constant 0 : index
    %41 = vector.load %arg8[%40, %c0_19] : memref<32x128xf32, #tpu.memory_space<vmem>>, vector<2x128xf32>
    tpu.vector_store %arg8[%40, %c0_19], %39 {strides = array<i32>} : memref<32x128xf32, #tpu.memory_space<vmem>>, vector<2x128xf32>,
    %c2_i32 = arith.constant 2 : i32
    %42 = arith.muli %c2_i32, %arg0 : i32
    %c1_i32 = arith.constant 1 : i32
    %43 = arith.subi %c1_i32, %42 : i32
    %c8_20 = arith.constant 8 : index
    %c0_21 = arith.constant 0 : index
    %44 = vector.load %arg7[%c8_20, %c0_21] : memref<32x128xf32, #tpu.memory_space<vmem>>, vector<16x128xf32>
    %c8_22 = arith.constant 8 : index
    %c0_23 = arith.constant 0 : index
    %45 = vector.load %arg8[%c8_22, %c0_23] : memref<32x128xf32, #tpu.memory_space<vmem>>, vector<16x128xf32>
    %c2_i32_24 = arith.constant 2 : i32
    %46 = arith.muli %c2_i32_24, %43 : i32
    %c8_i32_25 = arith.constant 8 : i32
    %47 = arith.subi %c8_i32_25, %46 : i32
    %48 = arith.index_cast %47 : i32 to index
    %c0_26 = arith.constant 0 : index
    %49 = vector.load %arg7[%48, %c0_26] : memref<32x128xf32, #tpu.memory_space<vmem>>, vector<16x128xf32>
    %50 = arith.index_cast %47 : i32 to index
    %c0_27 = arith.constant 0 : index
    %51 = vector.load %arg8[%50, %c0_27] : memref<32x128xf32, #tpu.memory_space<vmem>>, vector<16x128xf32>
    %52 = arith.mulf %44, %49 : vector<16x128xf32>
    %c8_28 = arith.constant 8 : index
    %c0_29 = arith.constant 0 : index
    %53 = vector.load %arg7[%c8_28, %c0_29] : memref<32x128xf32, #tpu.memory_space<vmem>>, vector<16x128xf32>
    tpu.vector_store %arg7[%c8_28, %c0_29], %52 {strides = array<i32>} : memref<32x128xf32, #tpu.memory_space<vmem>>, vector<16x128xf32>,
    %54 = arith.mulf %44, %51 : vector<16x128xf32>
    %55 = arith.addf %54, %45 : vector<16x128xf32>
    %c8_30 = arith.constant 8 : index
    %c0_31 = arith.constant 0 : index
    %56 = vector.load %arg8[%c8_30, %c0_31] : memref<32x128xf32, #tpu.memory_space<vmem>>, vector<16x128xf32>
    tpu.vector_store %arg8[%c8_30, %c0_31], %55 {strides = array<i32>} : memref<32x128xf32, #tpu.memory_space<vmem>>, vector<16x128xf32>,
    %c8_32 = arith.constant 8 : index
    %c0_33 = arith.constant 0 : index
    %57 = vector.load %arg7[%c8_32, %c0_33] : memref<32x128xf32, #tpu.memory_space<vmem>>, vector<16x128xf32>
    %c8_34 = arith.constant 8 : index
    %c0_35 = arith.constant 0 : index
    %58 = vector.load %arg8[%c8_34, %c0_35] : memref<32x128xf32, #tpu.memory_space<vmem>>, vector<16x128xf32>
    %c4_i32 = arith.constant 4 : i32
    %59 = arith.muli %c4_i32, %43 : i32
    %c8_i32_36 = arith.constant 8 : i32
    %60 = arith.subi %c8_i32_36, %59 : i32
    %61 = arith.index_cast %60 : i32 to index
    %c0_37 = arith.constant 0 : index
    %62 = vector.load %arg7[%61, %c0_37] : memref<32x128xf32, #tpu.memory_space<vmem>>, vector<16x128xf32>
    %63 = arith.index_cast %60 : i32 to index
    %c0_38 = arith.constant 0 : index
    %64 = vector.load %arg8[%63, %c0_38] : memref<32x128xf32, #tpu.memory_space<vmem>>, vector<16x128xf32>
    %65 = arith.mulf %57, %62 : vector<16x128xf32>
    %c8_39 = arith.constant 8 : index
    %c0_40 = arith.constant 0 : index
    %66 = vector.load %arg7[%c8_39, %c0_40] : memref<32x128xf32, #tpu.memory_space<vmem>>, vector<16x128xf32>
    tpu.vector_store %arg7[%c8_39, %c0_40], %65 {strides = array<i32>} : memref<32x128xf32, #tpu.memory_space<vmem>>, vector<16x128xf32>,
    %67 = arith.mulf %57, %64 : vector<16x128xf32>
    %68 = arith.addf %67, %58 : vector<16x128xf32>
    %c8_41 = arith.constant 8 : index
    %c0_42 = arith.constant 0 : index
    %69 = vector.load %arg8[%c8_41, %c0_42] : memref<32x128xf32, #tpu.memory_space<vmem>>, vector<16x128xf32>
    tpu.vector_store %arg8[%c8_41, %c0_42], %68 {strides = array<i32>} : memref<32x128xf32, #tpu.memory_space<vmem>>, vector<16x128xf32>,
    %c8_43 = arith.constant 8 : index
    %c0_44 = arith.constant 0 : index
    %70 = vector.load %arg7[%c8_43, %c0_44] : memref<32x128xf32, #tpu.memory_space<vmem>>, vector<16x128xf32>
    %c8_45 = arith.constant 8 : index
    %c0_46 = arith.constant 0 : index
    %71 = vector.load %arg8[%c8_45, %c0_46] : memref<32x128xf32, #tpu.memory_space<vmem>>, vector<16x128xf32>
    %c8_i32_47 = arith.constant 8 : i32
    %72 = arith.muli %c8_i32_47, %43 : i32
    %c8_i32_48 = arith.constant 8 : i32
    %73 = arith.subi %c8_i32_48, %72 : i32
    %74 = arith.index_cast %73 : i32 to index
    %c0_49 = arith.constant 0 : index
    %75 = vector.load %arg7[%74, %c0_49] : memref<32x128xf32, #tpu.memory_space<vmem>>, vector<16x128xf32>
    %76 = arith.index_cast %73 : i32 to index
    %c0_50 = arith.constant 0 : index
    %77 = vector.load %arg8[%76, %c0_50] : memref<32x128xf32, #tpu.memory_space<vmem>>, vector<16x128xf32>
    %78 = arith.mulf %70, %75 : vector<16x128xf32>
    %c8_51 = arith.constant 8 : index
    %c0_52 = arith.constant 0 : index
    %79 = vector.load %arg7[%c8_51, %c0_52] : memref<32x128xf32, #tpu.memory_space<vmem>>, vector<16x128xf32>
    tpu.vector_store %arg7[%c8_51, %c0_52], %78 {strides = array<i32>} : memref<32x128xf32, #tpu.memory_space<vmem>>, vector<16x128xf32>,
    %80 = arith.mulf %70, %77 : vector<16x128xf32>
    %81 = arith.addf %80, %71 : vector<16x128xf32>
    %c8_53 = arith.constant 8 : index
    %c0_54 = arith.constant 0 : index
    %82 = vector.load %arg8[%c8_53, %c0_54] : memref<32x128xf32, #tpu.memory_space<vmem>>, vector<16x128xf32>
    tpu.vector_store %arg8[%c8_53, %c0_54], %81 {strides = array<i32>} : memref<32x128xf32, #tpu.memory_space<vmem>>, vector<16x128xf32>,
    %c8_55 = arith.constant 8 : index
    %c0_56 = arith.constant 0 : index
    %83 = vector.load %arg8[%c8_55, %c0_56] : memref<32x128xf32, #tpu.memory_space<vmem>>, vector<16x128xf32>
    %84 = arith.mulf %25, %83 : vector<16x128xf32>
    %c0_57 = arith.constant 0 : index
    %c0_58 = arith.constant 0 : index
    %c0_59 = arith.constant 0 : index
    %85 = vector.load %arg5[%c0_57, %c0_58, %c0_59] : memref<1x16x128xf32, #tpu.memory_space<vmem>>, vector<1x16x128xf32>
    %86 = vector.shape_cast %85 : vector<1x16x128xf32> to vector<16x128xf32>
    %87 = vector.shape_cast %84 : vector<16x128xf32> to vector<1x16x128xf32>
    tpu.vector_store %arg5[%c0_57, %c0_58, %c0_59], %87 {strides = array<i32>} : memref<1x16x128xf32, #tpu.memory_space<vmem>>, vector<1x16x128xf32>,
    %c1_i32_60 = arith.constant 1 : i32
    %88 = arith.subi %c1_i32_60, %arg0 : i32
    %c14_i32_61 = arith.constant 14 : i32
    %89 = arith.muli %c14_i32_61, %88 : i32
    %c8_i32_62 = arith.constant 8 : i32
    %90 = arith.addi %c8_i32_62, %89 : i32
    %91 = arith.index_cast %90 : i32 to index
    %c0_63 = arith.constant 0 : index
    %92 = vector.load %arg8[%91, %c0_63] : memref<32x128xf32, #tpu.memory_space<vmem>>, vector<2x128xf32>
    %c0_64 = arith.constant 0 : index
    %c0_65 = arith.constant 0 : index
    %93 = vector.load %arg6[%c0_64, %c0_65] : memref<2x128xf32, #tpu.memory_space<vmem>>, vector<2x128xf32>
    tpu.vector_store %arg6[%c0_64, %c0_65], %92 {strides = array<i32>} : memref<2x128xf32, #tpu.memory_space<vmem>>, vector<2x128xf32>,
    return
  }
  func.func @transform_0(%arg0: i32, %arg1: i32) -> (i32, i32, i32) {
    %c2_i32 = arith.constant 2 : i32
    %0 = arith.muli %c2_i32, %arg1 : i32
    %c0_i32 = arith.constant 0 : i32
    %1 = arith.subi %c0_i32, %0 : i32
    %2 = arith.muli %arg0, %1 : i32
    %3 = arith.addi %arg1, %2 : i32
    %c0_i32_0 = arith.constant 0 : i32
    %c0_i32_1 = arith.constant 0 : i32
    return %arg0, %3, %c0_i32_0 : i32, i32, i32
  }
  func.func @transform_1(%arg0: i32, %arg1: i32) -> (i32, i32, i32) {
    %c0_i32 = arith.constant 0 : i32
    %c0_i32_0 = arith.constant 0 : i32
    %c0_i32_1 = arith.constant 0 : i32
    return %arg0, %c0_i32, %c0_i32_0 : i32, i32, i32
  }
  func.func @transform_2(%arg0: i32, %arg1: i32) -> (i32, i32, i32) {
    %c0_i32 = arith.constant 0 : i32
    %c0_i32_0 = arith.constant 0 : i32
    %c0_i32_1 = arith.constant 0 : i32
    return %arg0, %c0_i32, %c0_i32_0 : i32, i32, i32
  }
  func.func @transform_3(%arg0: i32, %arg1: i32) -> (i32, i32, i32) {
    %c2_i32 = arith.constant 2 : i32
    %0 = arith.muli %c2_i32, %arg1 : i32
    %c0_i32 = arith.constant 0 : i32
    %1 = arith.subi %c0_i32, %0 : i32
    %2 = arith.muli %arg0, %1 : i32
    %3 = arith.addi %arg1, %2 : i32
    %c0_i32_0 = arith.constant 0 : i32
    %c0_i32_1 = arith.constant 0 : i32
    return %arg0, %3, %c0_i32_0 : i32, i32, i32
  }
}

module attributes {stable_mosaic.version = 11 : i64} {
  func.func @kernel(%arg0: i32, %arg1: i32, %arg2: memref<1x16x192xbf16, #tpu.memory_space<vmem>>, %arg3: memref<1x192x384xbf16, #tpu.memory_space<vmem>>, %arg4: memref<1x1x384xf32, #tpu.memory_space<vmem>>, %arg5: memref<1x16x128xf32, #tpu.memory_space<vmem>>, %arg6: memref<2x128xf32, #tpu.memory_space<vmem>>, %arg7: memref<32x128xf32, #tpu.memory_space<vmem>>, %arg8: memref<32x128xf32, #tpu.memory_space<vmem>>) attributes {dimension_semantics = [#tpu.dimension_semantics<parallel>, #tpu.dimension_semantics<arbitrary>], iteration_bounds = array<i64: 2, 1>, scalar_prefetch = 0 : i64, scratch_operands = 3 : i64, tpu.core_type = #tpu.core_type<tc>, window_params = [{transform_indices = @transform_0, window_bounds = array<i64: 1, 16, 192>}, {transform_indices = @transform_1, window_bounds = array<i64: 1, 192, 384>}, {transform_indices = @transform_2, window_bounds = array<i64: 1, 1, 384>}, {transform_indices = @transform_3, window_bounds = array<i64: 1, 16, 128>}]} {
    %c0_i32 = arith.constant 0 : i32
    %0 = arith.cmpi eq, %arg1, %c0_i32 : i32
    %1 = arith.extui %0 : i1 to i32
    %c0_i32_0 = arith.constant 0 : i32
    %2 = arith.cmpi ne, %1, %c0_i32_0 : i32
    scf.if %2 {
      %cst_66 = arith.constant 0.000000e+00 : f32
      %94 = vector.broadcast %cst_66 : f32 to vector<2x128xf32>
      %c0_67 = arith.constant 0 : index
      %c0_68 = arith.constant 0 : index
      %95 = vector.load %arg6[%c0_67, %c0_68] : memref<2x128xf32, #tpu.memory_space<vmem>>, vector<2x128xf32>
      tpu.vector_store %arg6[%c0_67, %c0_68], %94 {strides = array<i32>} : memref<2x128xf32, #tpu.memory_space<vmem>>, vector<2x128xf32>,
      %cst_69 = arith.constant 1.000000e+00 : f32
      %96 = vector.broadcast %cst_69 : f32 to vector<32x128xf32>
      %c0_70 = arith.constant 0 : index
      %c0_71 = arith.constant 0 : index
      %97 = vector.load %arg7[%c0_70, %c0_71] : memref<32x128xf32, #tpu.memory_space<vmem>>, vector<32x128xf32>
      tpu.vector_store %arg7[%c0_70, %c0_71], %96 {strides = array<i32>} : memref<32x128xf32, #tpu.memory_space<vmem>>, vector<32x128xf32>,
      %cst_72 = arith.constant 0.000000e+00 : f32
      %98 = vector.broadcast %cst_72 : f32 to vector<32x128xf32>
      %c0_73 = arith.constant 0 : index
      %c0_74 = arith.constant 0 : index
      %99 = vector.load %arg8[%c0_73, %c0_74] : memref<32x128xf32, #tpu.memory_space<vmem>>, vector<32x128xf32>
      tpu.vector_store %arg8[%c0_73, %c0_74], %98 {strides = array<i32>} : memref<32x128xf32, #tpu.memory_space<vmem>>, vector<32x128xf32>,
    } else {
    }
    %c0 = arith.constant 0 : index
    %c0_1 = arith.constant 0 : index
    %c0_2 = arith.constant 0 : index
    %3 = vector.load %arg2[%c0, %c0_1, %c0_2] : memref<1x16x192xbf16, #tpu.memory_space<vmem>>, vector<1x16x192xbf16>
    %4 = vector.shape_cast %3 : vector<1x16x192xbf16> to vector<16x192xbf16>
    %c0_3 = arith.constant 0 : index
    %c0_4 = arith.constant 0 : index
    %c0_5 = arith.constant 0 : index
    %5 = vector.load %arg3[%c0_3, %c0_4, %c0_5] : memref<1x192x384xbf16, #tpu.memory_space<vmem>>, vector<1x192x384xbf16>
    %6 = vector.shape_cast %5 : vector<1x192x384xbf16> to vector<192x384xbf16>
    %cst = arith.constant dense<0.000000e+00> : vector<16x384xf32>
    %7 = tpu.matmul %4, %6, %cst {dimension_numbers = #tpu.dot_dimension_numbers<[1], [0], [0], [1], [0, 0, 1, 1], [], []>} : vector<16x192xbf16>, vector<192x384xbf16>, vector<16x384xf32> -> vector<16x384xf32>
    %c0_6 = arith.constant 0 : index
    %c0_7 = arith.constant 0 : index
    %c0_8 = arith.constant 0 : index
    %8 = vector.load %arg4[%c0_6, %c0_7, %c0_8] : memref<1x1x384xf32, #tpu.memory_space<vmem>>, vector<1x1x384xf32>
    %9 = vector.shape_cast %8 : vector<1x1x384xf32> to vector<1x384xf32>
    %10 = vector.broadcast %9 : vector<1x384xf32> to vector<16x384xf32>
    %11 = arith.addf %7, %10 : vector<16x384xf32>
    %12 = vector.extract_strided_slice %11 {offsets = [0, 0], sizes = [16, 128], strides = [1, 1]} : vector<16x384xf32> to vector<16x128xf32>
    %13 = math.tanh %12 : vector<16x128xf32>
    %14 = vector.extract_strided_slice %11 {offsets = [0, 128], sizes = [16, 128], strides = [1, 1]} : vector<16x384xf32> to vector<16x128xf32>
    %15 = arith.negf %14 : vector<16x128xf32>
    %16 = math.exp %15 : vector<16x128xf32>
    %cst_9 = arith.constant 1.000000e+00 : f32
    %17 = vector.broadcast %cst_9 : f32 to vector<16x128xf32>
    %18 = arith.addf %17, %16 : vector<16x128xf32>
    %19 = arith.divf %17, %18 : vector<16x128xf32>
    %20 = vector.extract_strided_slice %11 {offsets = [0, 256], sizes = [16, 128], strides = [1, 1]} : vector<16x384xf32> to vector<16x128xf32>
    %21 = arith.negf %20 : vector<16x128xf32>
    %22 = math.exp %21 : vector<16x128xf32>
    %cst_10 = arith.constant 1.000000e+00 : f32
    %23 = vector.broadcast %cst_10 : f32 to vector<16x128xf32>
    %24 = arith.addf %23, %22 : vector<16x128xf32>
    %25 = arith.divf %23, %24 : vector<16x128xf32>
    %c8 = arith.constant 8 : index
    %c0_11 = arith.constant 0 : index
    %26 = vector.load %arg7[%c8, %c0_11] : memref<32x128xf32, #tpu.memory_space<vmem>>, vector<16x128xf32>
    tpu.vector_store %arg7[%c8, %c0_11], %19 {strides = array<i32>} : memref<32x128xf32, #tpu.memory_space<vmem>>, vector<16x128xf32>,
    %cst_12 = arith.constant 1.000000e+00 : f32
    %27 = vector.broadcast %cst_12 : f32 to vector<16x128xf32>
    %28 = arith.subf %27, %19 : vector<16x128xf32>
    %29 = arith.mulf %28, %13 : vector<16x128xf32>
    %c8_13 = arith.constant 8 : index
    %c0_14 = arith.constant 0 : index
    %30 = vector.load %arg8[%c8_13, %c0_14] : memref<32x128xf32, #tpu.memory_space<vmem>>, vector<16x128xf32>
    tpu.vector_store %arg8[%c8_13, %c0_14], %29 {strides = array<i32>} : memref<32x128xf32, #tpu.memory_space<vmem>>, vector<16x128xf32>,
    %c14_i32 = arith.constant 14 : i32
    %31 = arith.muli %c14_i32, %arg0 : i32
    %c8_i32 = arith.constant 8 : i32
    %32 = arith.addi %c8_i32, %31 : i32
    %c0_15 = arith.constant 0 : index
    %c0_16 = arith.constant 0 : index
    %33 = vector.load %arg6[%c0_15, %c0_16] : memref<2x128xf32, #tpu.memory_space<vmem>>, vector<2x128xf32>
    %34 = arith.index_cast %32 : i32 to index
    %c0_17 = arith.constant 0 : index
    %35 = vector.load %arg8[%34, %c0_17] : memref<32x128xf32, #tpu.memory_space<vmem>>, vector<2x128xf32>
    %36 = arith.index_cast %32 : i32 to index
    %c0_18 = arith.constant 0 : index
    %37 = vector.load %arg7[%36, %c0_18] : memref<32x128xf32, #tpu.memory_space<vmem>>, vector<2x128xf32>
    %38 = arith.mulf %37, %33 : vector<2x128xf32>
    %39 = arith.addf %35, %38 : vector<2x128xf32>
    %40 = arith.index_cast %32 : i32 to index
    %c0_19 = arith.constant 0 : index
    %41 = vector.load %arg8[%40, %c0_19] : memref<32x128xf32, #tpu.memory_space<vmem>>, vector<2x128xf32>
    tpu.vector_store %arg8[%40, %c0_19], %39 {strides = array<i32>} : memref<32x128xf32, #tpu.memory_space<vmem>>, vector<2x128xf32>,
    %c2_i32 = arith.constant 2 : i32
    %42 = arith.muli %c2_i32, %arg0 : i32
    %c1_i32 = arith.constant 1 : i32
    %43 = arith.subi %c1_i32, %42 : i32
    %c8_20 = arith.constant 8 : index
    %c0_21 = arith.constant 0 : index
    %44 = vector.load %arg7[%c8_20, %c0_21] : memref<32x128xf32, #tpu.memory_space<vmem>>, vector<16x128xf32>
    %c8_22 = arith.constant 8 : index
    %c0_23 = arith.constant 0 : index
    %45 = vector.load %arg8[%c8_22, %c0_23] : memref<32x128xf32, #tpu.memory_space<vmem>>, vector<16x128xf32>
    %c2_i32_24 = arith.constant 2 : i32
    %46 = arith.muli %c2_i32_24, %43 : i32
    %c8_i32_25 = arith.constant 8 : i32
    %47 = arith.subi %c8_i32_25, %46 : i32
    %48 = arith.index_cast %47 : i32 to index
    %c0_26 = arith.constant 0 : index
    %49 = vector.load %arg7[%48, %c0_26] : memref<32x128xf32, #tpu.memory_space<vmem>>, vector<16x128xf32>
    %50 = arith.index_cast %47 : i32 to index
    %c0_27 = arith.constant 0 : index
    %51 = vector.load %arg8[%50, %c0_27] : memref<32x128xf32, #tpu.memory_space<vmem>>, vector<16x128xf32>
    %52 = arith.mulf %44, %49 : vector<16x128xf32>
    %c8_28 = arith.constant 8 : index
    %c0_29 = arith.constant 0 : index
    %53 = vector.load %arg7[%c8_28, %c0_29] : memref<32x128xf32, #tpu.memory_space<vmem>>, vector<16x128xf32>
    tpu.vector_store %arg7[%c8_28, %c0_29], %52 {strides = array<i32>} : memref<32x128xf32, #tpu.memory_space<vmem>>, vector<16x128xf32>,
    %54 = arith.mulf %44, %51 : vector<16x128xf32>
    %55 = arith.addf %54, %45 : vector<16x128xf32>
    %c8_30 = arith.constant 8 : index
    %c0_31 = arith.constant 0 : index
    %56 = vector.load %arg8[%c8_30, %c0_31] : memref<32x128xf32, #tpu.memory_space<vmem>>, vector<16x128xf32>
    tpu.vector_store %arg8[%c8_30, %c0_31], %55 {strides = array<i32>} : memref<32x128xf32, #tpu.memory_space<vmem>>, vector<16x128xf32>,
    %c8_32 = arith.constant 8 : index
    %c0_33 = arith.constant 0 : index
    %57 = vector.load %arg7[%c8_32, %c0_33] : memref<32x128xf32, #tpu.memory_space<vmem>>, vector<16x128xf32>
    %c8_34 = arith.constant 8 : index
    %c0_35 = arith.constant 0 : index
    %58 = vector.load %arg8[%c8_34, %c0_35] : memref<32x128xf32, #tpu.memory_space<vmem>>, vector<16x128xf32>
    %c4_i32 = arith.constant 4 : i32
    %59 = arith.muli %c4_i32, %43 : i32
    %c8_i32_36 = arith.constant 8 : i32
    %60 = arith.subi %c8_i32_36, %59 : i32
    %61 = arith.index_cast %60 : i32 to index
    %c0_37 = arith.constant 0 : index
    %62 = vector.load %arg7[%61, %c0_37] : memref<32x128xf32, #tpu.memory_space<vmem>>, vector<16x128xf32>
    %63 = arith.index_cast %60 : i32 to index
    %c0_38 = arith.constant 0 : index
    %64 = vector.load %arg8[%63, %c0_38] : memref<32x128xf32, #tpu.memory_space<vmem>>, vector<16x128xf32>
    %65 = arith.mulf %57, %62 : vector<16x128xf32>
    %c8_39 = arith.constant 8 : index
    %c0_40 = arith.constant 0 : index
    %66 = vector.load %arg7[%c8_39, %c0_40] : memref<32x128xf32, #tpu.memory_space<vmem>>, vector<16x128xf32>
    tpu.vector_store %arg7[%c8_39, %c0_40], %65 {strides = array<i32>} : memref<32x128xf32, #tpu.memory_space<vmem>>, vector<16x128xf32>,
    %67 = arith.mulf %57, %64 : vector<16x128xf32>
    %68 = arith.addf %67, %58 : vector<16x128xf32>
    %c8_41 = arith.constant 8 : index
    %c0_42 = arith.constant 0 : index
    %69 = vector.load %arg8[%c8_41, %c0_42] : memref<32x128xf32, #tpu.memory_space<vmem>>, vector<16x128xf32>
    tpu.vector_store %arg8[%c8_41, %c0_42], %68 {strides = array<i32>} : memref<32x128xf32, #tpu.memory_space<vmem>>, vector<16x128xf32>,
    %c8_43 = arith.constant 8 : index
    %c0_44 = arith.constant 0 : index
    %70 = vector.load %arg7[%c8_43, %c0_44] : memref<32x128xf32, #tpu.memory_space<vmem>>, vector<16x128xf32>
    %c8_45 = arith.constant 8 : index
    %c0_46 = arith.constant 0 : index
    %71 = vector.load %arg8[%c8_45, %c0_46] : memref<32x128xf32, #tpu.memory_space<vmem>>, vector<16x128xf32>
    %c8_i32_47 = arith.constant 8 : i32
    %72 = arith.muli %c8_i32_47, %43 : i32
    %c8_i32_48 = arith.constant 8 : i32
    %73 = arith.subi %c8_i32_48, %72 : i32
    %74 = arith.index_cast %73 : i32 to index
    %c0_49 = arith.constant 0 : index
    %75 = vector.load %arg7[%74, %c0_49] : memref<32x128xf32, #tpu.memory_space<vmem>>, vector<16x128xf32>
    %76 = arith.index_cast %73 : i32 to index
    %c0_50 = arith.constant 0 : index
    %77 = vector.load %arg8[%76, %c0_50] : memref<32x128xf32, #tpu.memory_space<vmem>>, vector<16x128xf32>
    %78 = arith.mulf %70, %75 : vector<16x128xf32>
    %c8_51 = arith.constant 8 : index
    %c0_52 = arith.constant 0 : index
    %79 = vector.load %arg7[%c8_51, %c0_52] : memref<32x128xf32, #tpu.memory_space<vmem>>, vector<16x128xf32>
    tpu.vector_store %arg7[%c8_51, %c0_52], %78 {strides = array<i32>} : memref<32x128xf32, #tpu.memory_space<vmem>>, vector<16x128xf32>,
    %80 = arith.mulf %70, %77 : vector<16x128xf32>
    %81 = arith.addf %80, %71 : vector<16x128xf32>
    %c8_53 = arith.constant 8 : index
    %c0_54 = arith.constant 0 : index
    %82 = vector.load %arg8[%c8_53, %c0_54] : memref<32x128xf32, #tpu.memory_space<vmem>>, vector<16x128xf32>
    tpu.vector_store %arg8[%c8_53, %c0_54], %81 {strides = array<i32>} : memref<32x128xf32, #tpu.memory_space<vmem>>, vector<16x128xf32>,
    %c8_55 = arith.constant 8 : index
    %c0_56 = arith.constant 0 : index
    %83 = vector.load %arg8[%c8_55, %c0_56] : memref<32x128xf32, #tpu.memory_space<vmem>>, vector<16x128xf32>
    %84 = arith.mulf %25, %83 : vector<16x128xf32>
    %c0_57 = arith.constant 0 : index
    %c0_58 = arith.constant 0 : index
    %c0_59 = arith.constant 0 : index
    %85 = vector.load %arg5[%c0_57, %c0_58, %c0_59] : memref<1x16x128xf32, #tpu.memory_space<vmem>>, vector<1x16x128xf32>
    %86 = vector.shape_cast %85 : vector<1x16x128xf32> to vector<16x128xf32>
    %87 = vector.shape_cast %84 : vector<16x128xf32> to vector<1x16x128xf32>
    tpu.vector_store %arg5[%c0_57, %c0_58, %c0_59], %87 {strides = array<i32>} : memref<1x16x128xf32, #tpu.memory_space<vmem>>, vector<1x16x128xf32>,
    %c1_i32_60 = arith.constant 1 : i32
    %88 = arith.subi %c1_i32_60, %arg0 : i32
    %c14_i32_61 = arith.constant 14 : i32
    %89 = arith.muli %c14_i32_61, %88 : i32
    %c8_i32_62 = arith.constant 8 : i32
    %90 = arith.addi %c8_i32_62, %89 : i32
    %91 = arith.index_cast %90 : i32 to index
    %c0_63 = arith.constant 0 : index
    %92 = vector.load %arg8[%91, %c0_63] : memref<32x128xf32, #tpu.memory_space<vmem>>, vector<2x128xf32>
    %c0_64 = arith.constant 0 : index
    %c0_65 = arith.constant 0 : index
    %93 = vector.load %arg6[%c0_64, %c0_65] : memref<2x128xf32, #tpu.memory_space<vmem>>, vector<2x128xf32>
    tpu.vector_store %arg6[%c0_64, %c0_65], %92 {strides = array<i32>} : memref<2x128xf32, #tpu.memory_space<vmem>>, vector<2x128xf32>,
    return
  }
  func.func @transform_0(%arg0: i32, %arg1: i32) -> (i32, i32, i32) {
    %c2_i32 = arith.constant 2 : i32
    %0 = arith.muli %c2_i32, %arg1 : i32
    %c0_i32 = arith.constant 0 : i32
    %1 = arith.subi %c0_i32, %0 : i32
    %2 = arith.muli %arg0, %1 : i32
    %3 = arith.addi %arg1, %2 : i32
    %c0_i32_0 = arith.constant 0 : i32
    %c0_i32_1 = arith.constant 0 : i32
    return %arg0, %3, %c0_i32_0 : i32, i32, i32
  }
  func.func @transform_1(%arg0: i32, %arg1: i32) -> (i32, i32, i32) {
    %c0_i32 = arith.constant 0 : i32
    %c0_i32_0 = arith.constant 0 : i32
    %c0_i32_1 = arith.constant 0 : i32
    return %arg0, %c0_i32, %c0_i32_0 : i32, i32, i32
  }
  func.func @transform_2(%arg0: i32, %arg1: i32) -> (i32, i32, i32) {
    %c0_i32 = arith.constant 0 : i32
    %c0_i32_0 = arith.constant 0 : i32
    %c0_i32_1 = arith.constant 0 : i32
    return %arg0, %c0_i32, %c0_i32_0 : i32, i32, i32
  }
  func.func @transform_3(%arg0: i32, %arg1: i32) -> (i32, i32, i32) {
    %c2_i32 = arith.constant 2 : i32
    %0 = arith.muli %c2_i32, %arg1 : i32
    %c0_i32 = arith.constant 0 : i32
    %1 = arith.subi %c0_i32, %0 : i32
    %2 = arith.muli %arg0, %1 : i32
    %3 = arith.addi %arg1, %2 : i32
    %c0_i32_0 = arith.constant 0 : i32
    %c0_i32_1 = arith.constant 0 : i32
    return %arg0, %3, %c0_i32_0 : i32, i32, i32
  }
}

</mosaic_0001>

<bundles_post_ra>
// kernel: _lambda_.2
= control target key start
LH: loop header
LB: loop body
LE: loop exit
PB: predicated region body
PF: predicated region fallthrough
CT: control target
= control target key end

     0   :  { %8 = vsyncpa [#allocation6], 0  ;;  %s1186_s0 = inlined_call_operand.vmem [shape: bf16[2,16,48], index: 0, kind: input, shape index: {}]   ;;  %s1187_s1 = inlined_call_operand.vmem [shape: bf16[2,48,384], index: 1, kind: input, shape index: {}]   ;;  %s1188_s2 = inlined_call_operand.hbm [shape: f32[2,1,384], index: 2, kind: input, shape index: {}]   ;;  %s1189_s3 = inlined_call_operand.vmem [shape: f32[2,16,128], index: 3, kind: output, shape index: {}]  }
   0x1   :  { %10 = vsyncpa [#allocation6 + $0x1], 0  ;;  %s1031_s12 = smov 0   ;;  %s1033_s13 = smov 0  }
   0x2   :  { %s1035_s14 = smov 0   ;;  %s1037_s15 = smov 0  }
   0x3   :  { %s1039_s16 = smov 0   ;;  %s1041_s17 = smov 0  }
   0x4 LB: > { %s775_s18 = sadd.s32 4294967295, %s1004_s17   ;;  %s28_s19 = sadd.s32 1, %s1000_s16  ;;  %s1004_s17 = sphi %s1041_s17, %s16_s17   ;;  %s1000_s16 = sphi %s1039_s16, %s1198_s16   ;;  %s996_s15 = sphi %s1037_s15, %s1197_s15   ;;  %s992_s14 = sphi %s1035_s14, %s1196_s14   ;;  %s988_s13 = sphi %s1033_s13, %s1195_s13   ;;  %s984_s12 = sphi %s1031_s12, %s1194_s12  }
   0x5   : > { %p30_p0 = scmp.ge.s32.totalorder %s28_s19, 2  ;;  %s97_s20 = sadd.s32 1, %s992_s14 }
   0x6   : > { %p104_p1 = scmp.ne.s32.totalorder %s992_s14, %s988_s13  ;;  %p105_p2 = scmp.eq.s32.totalorder %s1004_s17, 0 }
   0x7   : > { %s1200_s19 = smov (%p30_p0, %s28_s19), 0  ;;  %p110_p4 = scmp.ne.s32.totalorder %s988_s13, %s984_s12 }
   0x8   : > { %p106_p3 = por %p105_p2, %p104_p1  ;;  %s94_s21 = ssub.s32 %s1000_s16, %s1200_s19 }
   0x9   : > { %p111_p5 = scmp.eq.s32.totalorder %s775_s18, 0  ;;  %p95_p6 = scmp.eq.s32.totalorder %s94_s21, 0 }
   0xa   : > { %p838_p8 = scmp.lt.s32.totalorder %s1004_s17, 2  ;;  %s199_s24 = sand.u32 1, %s992_s14  }
   0xb   : > { %p1070_p7 = por %p111_p5, %p110_p4  ;;  %s829_s25 = smul.u32 48, %s1000_s16 }
   0xc   : > { %s1076_s23 = scalar_select %p95_p6, %s992_s14, %s97_s20  }
   0xd   : > { %s828_s26 = smul.u32 3, %s199_s24  ;;  %s1083_s29 = scalar_lea.hbm %s1188_s2, %s829_s25 }
   0xe   : > { %p1085_p9 = pnand %p838_p8, %p106_p3  ;;  %s200_s6 = scalar_lea.sflag [#allocation6], %s199_s24 }
   0xf   : > { %s203_s4 = scalar_lea.vmem [#allocation5], %s828_s26  ;;  %s924_s7 = scalar_lea.hbm %s1083_s29, 48 }
  0x10   : > { %s211_s5 = sshll.u32 %s203_s4, 4  ;;  %p925_p12 = scmp.ne.s32.totalorder %s1083_s29, %s924_s7  ;;  %s1090_s5 = int_to_ptr.vmem [resolvable:$true] %s211_s5 }
  0x11   : > { %p926_p13 = pneg %p1085_p9  ;;  %s929_s10 = scalar_lea.hbm %s1188_s2, 96 }
  0x12   : > { %p930_p2 = scmp.lt.u32.totalorder %s1083_s29, %s1188_s2  ;;  %p931_p3 = scmp.lt.u32.totalorder %s929_s10, %s924_s7 }
  0x13   : > { %p927_p0 = pnand %p926_p13, %p925_p12  ;;  %p933_p5 = scmp.lt.u32.totalorder %s924_s7, %s1083_s29 }
  0x14   : > { %p932_p4 = por %p931_p3, %p930_p2 }
  0x15   : > { %p928_p1 = pneg %p927_p0 }
  0x16   : > { %p934_p6 = por %p933_p5, %p932_p4 }
  0x18   : > { %p935_p8 = pnand %p934_p6, %p928_p1 }
  0x1a   : > { %938 = shalt.err (!%p935_p8)
}
  0x1b   : > { %s939_s18 = scalar_lea.vmem %s1090_s5, 48  ;;  %s1006_s20 = smov [#allocation5]  }
  0x1c   : > { %p940_p12 = scmp.ne.s32.totalorder %s1090_s5, %s939_s18  ;;  %s944_s21 = sshll.u32 %s1006_s20, 4  ;;  %s945_s21 = int_to_ptr.vmem [resolvable:$false] %s944_s21 }
  0x1d   : > { %s946_s24 = scalar_lea.vmem %s945_s21, 96  ;;  %p947_p11 = scmp.lt.s32.totalorder %s1090_s5, %s945_s21 }
  0x1e   : > { %p942_p0 = pnand %p940_p12, %p926_p13  ;;  %p948_p2 = scmp.lt.s32.totalorder %s946_s24, %s939_s18 }
  0x20   : > { %p943_p10 = pneg %p942_p0  ;;  %p949_p3 = por %p948_p2, %p947_p11 }
  0x22   : > { %p950_p4 = pnand %p949_p3, %p943_p10 }
  0x24   : > { %953 = shalt.err (!%p950_p4)
}
  0x25   : > { %837 = dma.hbm_to_vmem [thread:$0]  (!%p1085_p9), %s1083_s29, 48, %s1090_s5, %s200_s6  }
  0x26   : > { %p1192_p1 = scmp.lt.s32.totalorder %s1004_s17, 3  ;;  %p1193_p5 = scmp.ge.s32.totalorder %s1004_s17, 1 }
  0x28   : > { %p217_p13 = pnand %p1193_p5, %p1192_p1 }
  0x29   : > { %s222_s25 = sand.u32 (!%p217_p13), 1, %s988_s13  }
  0x2a   : > { %220 = sbr.rel (%p217_p13) target bundleno = 372 (0x174), region = 32  ;;  %s223_s27 = scalar_lea.sflag (!%p217_p13), [#allocation6], %s222_s25 }
  0x2b   : > { %s1123_s26 = smul.u32 (!%p217_p13), 3, %s222_s25 }
  0x2d   : > { %s226_s28 = scalar_lea.vmem (!%p217_p13), [#allocation5], %s1123_s26 }
  0x31   : > { %979 = dma.done.wait (%p1070_p7), %s223_s27, 48  }
  0x32   : > { %981 = vsyncadd (%p1070_p7), %s223_s27, 4294967248  ;;  %p280_p9 = scmp.lt.s32.totalorder %s996_s15, 1  ;;  %v1007_v0 = vmov 0   ;;  %v1008_v1 = vmov 0.0   ;;  %vm1009_vm0 = vmmov 0   ;;  %vm414_vm1 = vcmask 392192  }
  0x33   : > { %450 = vmatprep.mubr.bf16.mxu0 %v1007_v0  ;;  %321 = vst [vmem:[#allocation2] sm:$0x3] %v1008_v1  ;;  %326 = vst [vmem:[#allocation4] sm:$0xff] %v1008_v1  ;;  %818 = vmatprep.subr.bf16.mxu1 %v1008_v1  ;;  %v1010_v12 = vmov 1.0   ;;  %v346_v13 = vlaneseq  ;;  %v344_v16 = vld [vmem:[%s226_s28] sm:$0x7] }
  0x34   : > { %329 = vst [vmem:[#allocation4 + $0x18] sm:$0xff] %v1008_v1  ;;  %s1132_s29 = scalar_select %p280_p9, %s996_s15, 1  ;;  %824 = vmatprep.mubr.msk.bf16.mxu1 %vm1009_vm0, %v1008_v1  ;;  %322 = vst [vmem:[#allocation3] sm:$0xff] %v1010_v12 }
  0x35   : > { %325 = vst [vmem:[#allocation3 + $0x18] sm:$0xff] %v1010_v12  ;;  %v347_v14 = vshrl.u32 %v346_v13, 7  ;;  %s805_s10 = sshll.u32 %s996_s15, 1  ;;  %s708_s18 = smul.u32 14, %s996_s15 }
  0x36   : > { %s831_s30 = smul.u32 72, %s1132_s29  ;;  %s812_s6 = sshll.u32 %s1132_s29, 3 }
  0x37   : > { %s287_s9 = scalar_lea.vmem %s1186_s0, %s812_s6  ;;  %v352_v15 = vsub.s32 1, %v347_v14  ;;  %v348_v30 = vsub.s32 0, %v347_v14  ;;  %s1145_s11 = ssub.s32 1, %s805_s10  ;;  %v356_v46 = vsub.s32 2, %v347_v14 }
  0x38   : > { %s297_s5 = scalar_lea.vmem %s1187_s1, %s831_s30  ;;  %v900_v10 = vld [vmem:[%s287_s9] sm:$0xff]   ;;  %s806_s12 = sshll.u32 %s1145_s11, 1 }
  0x39   : > { %v891_v2 = vld [vmem:[%s297_s5 + $0x4] ss:$12 sps:$4 sm:$0xff]   ;;  %v893_v3 = vld [vmem:[%s297_s5] ss:$12 sps:$4 sm:$0xff]   ;;  %v894_v4 = vld [vmem:[%s297_s5 + $0x1c] ss:$12 sps:$4 sm:$0xff]   ;;  %v353_v17 = vrot.slane %v344_v16, %v352_v15  ;;  %v349_v31 = vrot.slane %v344_v16, %v348_v30  ;;  %v357_v53 = vrot.slane %v344_v16, %v356_v46 }
  0x3a   : > { %418 = vmatprep.subr.bf16.mxu0 %v891_v2  ;;  %v896_v5 = vld [vmem:[%s297_s5 + $0x18] ss:$12 sps:$4 sm:$0xff]   ;;  %v897_v6 = vld [vmem:[%s297_s5 + $0x34] ss:$12 sps:$4 sm:$0xff]   ;;  %v899_v8 = vld [vmem:[%s297_s5 + $0x30] ss:$12 sps:$4 sm:$0xff]  }
  0x3b   : > { %419 = vmatpush1.bf16.msra.mxu0 %v893_v3  ;;  %v901_v7 = vld [vmem:[%s297_s5 + $0x8] ss:$12 sps:$4 sm:$0xff]   ;;  %v902_v9 = vld [vmem:[%s297_s5 + $0x20] ss:$12 sps:$4 sm:$0xff]   ;;  %v903_v11 = vld [vmem:[%s297_s5 + $0x38] ss:$12 sps:$4 sm:$0xff]  }
  0x3c   : > { %420 = vmatprep.subr.bf16.mxu0 %v894_v4  ;;  %819 = vmatpush3.bf16.msra.mxu1 %v901_v7  ;;  %s1149_s20 = ssub.s32 8, %s806_s12  ;;  %v538_v47 = vld [vmem:[#allocation2] sm:$0x3]  ;;  %s712_s21 = scalar_lea.vmem [#allocation3], %s708_s18 }
  0x3d   : > { %820 = vmatprep.subr.bf16.mxu1 %v1008_v1  ;;  %s554_s24 = scalar_lea.vmem [#allocation3], %s1149_s20  ;;  %s807_s25 = sshll.u32 %s1145_s11, 2 }
  0x3e   : > { %s709_s26 = scalar_lea.vmem [#allocation4], %s708_s18  ;;  %s1153_s27 = ssub.s32 8, %s807_s25 }
  0x3f   : > { %421 = vmatpush1.bf16.msra.mxu0 %v896_v5  ;;  %s576_s28 = scalar_lea.vmem [#allocation3], %s1153_s27  ;;  %s808_s30 = sshll.u32 %s1145_s11, 3 }
  0x40   : > { %422 = vmatprep.subr.bf16.mxu0 %v897_v6  ;;  %821 = vmatpush3.bf16.msra.mxu1 %v902_v9  ;;  %s557_s4 = scalar_lea.vmem [#allocation4], %s1149_s20  ;;  %s1158_s22 = ssub.s32 8, %s808_s30 }
  0x41   : > { %822 = vmatprep.subr.bf16.mxu1 %v1008_v1  ;;  %s598_s5 = scalar_lea.vmem [#allocation3], %s1158_s22  ;;  %s579_s6 = scalar_lea.vmem [#allocation4], %s1153_s27 }
  0x42   : > { %s601_s7 = scalar_lea.vmem [#allocation4], %s1158_s22  ;;  %s813_s8 = sshll.u32 %s1132_s29, 4 }
  0x43   : > { %423 = vmatpush1.bf16.msra.mxu0 %v899_v8  ;;  %s620_s9 = ssub.s32 1, %s996_s15  ;;  %s310_s12 = scalar_lea.vmem %s1189_s3, %s813_s8 }
  0x44   : > { %823 = vmatpush3.bf16.msra.mxu1 %v903_v11  ;;  %s720_s18 = smul.u32 14, %s620_s9 }
  0x46   : > { %796 = vmatmul.mubr.msk.bf16.vlgmr.msra.gmra.mrb[0].mxu0 %vm414_vm1, %v900_v10  ;;  %s721_s20 = scalar_lea.vmem [#allocation4], %s720_s18 }
  0x47   : > { %825 = vmatmul.mubr.msk.bf16.vlgmr.msra.gmra.mrb[0].mxu1 %vm414_vm1, %v900_v10 }
 0x119   : > { %v452_v18 = vpop.f32.mrb[0].mxu0 }
 0x11a   : > { %v454_v19 = vpop.f32.mrb[1].mxu0  ;;  %v495_v25 = vpop.f32.mrb[0].mxu1  ;;  %v453_v33 = vadd.f32 %v452_v18, %v349_v31 }
 0x11b   : > { %v455_v20 = vadd.f32 %v454_v19, %v353_v17  ;;  %v456_v21 = vpop.f32.mrb[2].mxu0  ;;  %v826_v26 = vpop.f32.mrb[1].mxu1  ;;  %v496_v57 = vadd.f32 %v495_v25, %v357_v53 }
 0x11c   : > { %v458_v22 = vpop.f32.mrb[3].mxu0  ;;  %v498_v28 = vpop.f32.mrb[2].mxu1  ;;  %v457_v36 = vadd.f32 %v456_v21, %v349_v31 }
 0x11d   : > { %v798_v23 = vmul.f32 -1.442695, %v455_v20  ;;  %v459_v24 = vadd.f32 %v458_v22, %v353_v17  ;;  %v827_v29 = vpop.f32.mrb[3].mxu1  ;;  %v499_v58 = vadd.f32 %v498_v28, %v357_v53  ;;  %v800_v59 = vmul.f32 -1.442695, %v496_v57 }
 0x11f   : > { %904 = vpow2.f32 %v798_v23  ;;  %v799_v27 = vmul.f32 -1.442695, %v459_v24  ;;  %v801_v62 = vmul.f32 -1.442695, %v499_v58 }
 0x121   : > { %906 = vpow2.f32 %v799_v27 }
 0x129   : > { %v905_v32 = vpop.eup %904 }
 0x12a   : > { %v510_v34 = vadd.f32 1.0, %v905_v32 }
 0x12b   : > { %v907_v35 = vpop.eup %906 }
 0x12c   : > { %908 = vrcp.f32 %v510_v34  ;;  %v511_v37 = vadd.f32 1.0, %v907_v35 }
 0x12d   : > { %910 = vtanh.f32 %v453_v33 }
 0x12e   : > { %912 = vrcp.f32 %v511_v37 }
 0x12f   : > { %914 = vtanh.f32 %v457_v36 }
 0x130   : > { %916 = vpow2.f32 %v800_v59 }
 0x131   : > { %918 = vpow2.f32 %v801_v62 }
 0x136   : > { %v909_v38 = vpop.eup %908 }
 0x137   : > { %v911_v39 = vpop.eup %910  ;;  %528 = vst [vmem:[#allocation3 + $0x8] sm:$0xff] %v909_v38  ;;  %v530_v40 = vsub.f32 1.0, %v909_v38 }
 0x138   : > { %v913_v41 = vpop.eup %912 }
 0x139   : > { %v532_v42 = vmul.f32 %v911_v39, %v530_v40  ;;  %529 = vst [vmem:[#allocation3 + $0x10] sm:$0xff] %v913_v41  ;;  %v531_v43 = vsub.f32 1.0, %v913_v41  ;;  %v915_v44 = vpop.eup %914 }
 0x13a   : > { %v917_v13 = vpop.eup %916 }
 0x13b   : > { %534 = vst [vmem:[#allocation4 + $0x8] sm:$0xff] %v532_v42  ;;  %v533_v45 = vmul.f32 %v915_v44, %v531_v43  ;;  %v919_v14 = vpop.eup %918  ;;  %v522_v15 = vadd.f32 1.0, %v917_v13 }
 0x13c   : > { %v523_v18 = vadd.f32 1.0, %v919_v14 }
 0x13d   : > { %535 = vst [vmem:[#allocation4 + $0x10] sm:$0xff] %v533_v45  ;;  %920 = vrcp.f32 %v522_v15 }
 0x13e   : > { %922 = vrcp.f32 %v523_v18 }
 0x140   : > { %v803_v48 = vld [vmem:[%s712_s21 + $0x8] sm:$0x3]  ;;  %v555_v49 = vld [vmem:[%s554_s24] sm:$0xff] }
 0x141   : > { %v556_v50 = vld [vmem:[%s554_s24 + $0x8] sm:$0xff]  ;;  %v560_v51 = vmul.f32 %v909_v38, %v555_v49  ;;  %v543_v54 = vmul.f32 %v803_v48, %v538_v47 }
 0x142   : > { %v561_v52 = vmul.f32 %v913_v41, %v556_v50 }
 0x143   : > { %562 = vst [vmem:[#allocation3 + $0x8] sm:$0xff] %v560_v51 }
 0x144   : > { %563 = vst [vmem:[#allocation3 + $0x10] sm:$0xff] %v561_v52  ;;  %v802_v55 = vld [vmem:[%s709_s26 + $0x8] sm:$0x3] }
 0x145   : > { %v544_v56 = vadd.f32 %v802_v55, %v543_v54 }
 0x147   : > { %804 = vst [vmem:[%s709_s26 + $0x8] sm:$0x3] %v544_v56  ;;  %v921_v25 = vpop.eup %920 }
 0x148   : > { %v923_v28 = vpop.eup %922 }
 0x14b   : > { %v577_v60 = vld [vmem:[%s576_s28] sm:$0xff]  ;;  %v578_v61 = vld [vmem:[%s576_s28 + $0x8] sm:$0xff] }
 0x14c   : > { %v582_v63 = vmul.f32 %v577_v60, %v560_v51  ;;  %v583_v0 = vmul.f32 %v578_v61, %v561_v52 }
 0x14e   : > { %584 = vst [vmem:[#allocation3 + $0x8] sm:$0xff] %v582_v63  ;;  %585 = vst [vmem:[#allocation3 + $0x10] sm:$0xff] %v583_v0  ;;  %v558_v1 = vld [vmem:[%s557_s4] sm:$0xff]  ;;  %v559_v2 = vld [vmem:[%s557_s4 + $0x8] sm:$0xff] }
 0x14f   : > { %v564_v3 = vmul.f32 %v909_v38, %v558_v1  ;;  %v550_v4 = vld [vmem:[#allocation4 + $0x8] sm:$0xff]  ;;  %v565_v5 = vmul.f32 %v913_v41, %v559_v2  ;;  %v551_v6 = vld [vmem:[#allocation4 + $0x10] sm:$0xff] }
 0x151   : > { %v566_v7 = vadd.f32 %v564_v3, %v550_v4  ;;  %v567_v8 = vadd.f32 %v565_v5, %v551_v6 }
 0x153   : > { %568 = vst [vmem:[#allocation4 + $0x8] sm:$0xff] %v566_v7  ;;  %569 = vst [vmem:[#allocation4 + $0x10] sm:$0xff] %v567_v8 }
 0x155   : > { %v599_v9 = vld [vmem:[%s598_s5] sm:$0xff]  ;;  %v600_v10 = vld [vmem:[%s598_s5 + $0x8] sm:$0xff] }
 0x156   : > { %v604_v11 = vmul.f32 %v599_v9, %v582_v63  ;;  %v605_v12 = vmul.f32 %v600_v10, %v583_v0 }
 0x158   : > { %606 = vst [vmem:[#allocation3 + $0x8] sm:$0xff] %v604_v11  ;;  %607 = vst [vmem:[#allocation3 + $0x10] sm:$0xff] %v605_v12 }
 0x15a   : > { %v580_v16 = vld [vmem:[%s579_s6] sm:$0xff]  ;;  %v581_v17 = vld [vmem:[%s579_s6 + $0x8] sm:$0xff] }
 0x15b   : > { %v586_v19 = vmul.f32 %v580_v16, %v560_v51  ;;  %v587_v20 = vmul.f32 %v581_v17, %v561_v52 }
 0x15d   : > { %v588_v21 = vadd.f32 %v586_v19, %v566_v7  ;;  %v589_v22 = vadd.f32 %v587_v20, %v567_v8 }
 0x15f   : > { %590 = vst [vmem:[#allocation4 + $0x8] sm:$0xff] %v588_v21  ;;  %591 = vst [vmem:[#allocation4 + $0x10] sm:$0xff] %v589_v22 }
 0x166   : > { %v602_v23 = vld [vmem:[%s601_s7] sm:$0xff]  ;;  %v603_v24 = vld [vmem:[%s601_s7 + $0x8] sm:$0xff] }
 0x167   : > { %v608_v26 = vmul.f32 %v602_v23, %v582_v63  ;;  %v609_v27 = vmul.f32 %v603_v24, %v583_v0 }
 0x169   : > { %v610_v29 = vadd.f32 %v608_v26, %v588_v21  ;;  %v611_v30 = vadd.f32 %v609_v27, %v589_v22 }
 0x16b   : > { %612 = vst [vmem:[#allocation4 + $0x8] sm:$0xff] %v610_v29  ;;  %613 = vst [vmem:[#allocation4 + $0x10] sm:$0xff] %v611_v30  ;;  %v616_v31 = vmul.f32 %v921_v25, %v610_v29  ;;  %v617_v32 = vmul.f32 %v923_v28, %v611_v30 }
 0x16d   : > { %618 = vst [vmem:[%s310_s12] sm:$0xff] %v616_v31  ;;  %619 = vst [vmem:[%s310_s12 + $0x8] sm:$0xff] %v617_v32 }
 0x172   : > { %v809_v33 = vld [vmem:[%s721_s20 + $0x8] sm:$0x3] }
 0x173   : > { %625 = vst [vmem:[#allocation2] sm:$0x3] %v809_v33 }
 0x174 PF: > { %s16_s17 = sadd.s32 1, %s1004_s17   ;;  %s1194_s12 = smov %s988_s13 }
 0x175   : > { %p13_p7 = scmp.ge.s32.totalorder %s16_s17, 4   ;;  %s1195_s13 = smov %s992_s14 }
 0x176   : > { %s1196_s14 = smov %s1076_s23  ;;  %s1197_s15 = smov %s1000_s16 }
 0x177   : > { %s1198_s16 = smov %s1200_s19  ;;  %15 = sbr.rel (!%p13_p7) target bundleno = 4 (0x4), region = 91 }
 0x17e   :  { %668 = vsyncpa [#allocation6], 1 }
 0x17f   :  { %670 = vsyncpa [#allocation6 + $0x1], 1 }

// kernel: _lambda_.3
= control target key start
LH: loop header
LB: loop body
LE: loop exit
PB: predicated region body
PF: predicated region fallthrough
CT: control target
= control target key end

     0   :  { %s1146_s12 = smov 0   ;;  %s1148_s13 = smov 0   ;;  %s1272_s0 = inlined_call_operand.vmem [shape: bf16[2,16,192], index: 0, kind: input, shape index: {}]   ;;  %s1273_s1 = inlined_call_operand.vmem [shape: bf16[2,192,384], index: 1, kind: input, shape index: {}]   ;;  %s1274_s2 = inlined_call_operand.vmem [shape: f32[2,1,384], index: 2, kind: input, shape index: {}]   ;;  %s1275_s3 = inlined_call_operand.vmem [shape: f32[2,16,128], index: 3, kind: output, shape index: {}]  }
   0x1   :  { %s1150_s14 = smov 0  }
   0x2 LB: > { %s25_s15 = sadd.s32 1, %s1117_s13  ;;  %p937_p0 = scmp.ge.s32.totalorder %s1121_s14, 1  ;;  %s1121_s14 = sphi %s1150_s14, %s13_s14   ;;  %s1117_s13 = sphi %s1148_s13, %s1277_s13   ;;  %s1113_s12 = sphi %s1146_s12, %s1276_s12  }
   0x3   : > { %p27_p1 = scmp.ge.s32.totalorder %s25_s15, 2  ;;  %p202_p2 = scmp.lt.s32.totalorder %s1121_s14, 3 }
   0x5   : > { %s1279_s15 = smov (%p27_p1, %s25_s15), 0  ;;  %p203_p3 = pnand %p937_p0, %p202_p2 }
   0x6   : > { %p257_p4 = scmp.lt.s32.totalorder (!%p203_p3), %s1113_s12, 1  ;;  %v1123_v0 = vmov (!%p203_p3), 0   ;;  %vm580_vm0 = vcmask (!%p203_p3), 523264   ;;  %v1124_v39 = vmov (!%p203_p3), 0.0   ;;  %v1125_v40 = vmov (!%p203_p3), 1.0   ;;  %s990_s29 = sshll.u32 (!%p203_p3), %s1113_s12, 1 }
   0x7   : > { %206 = sbr.rel (%p203_p3) target bundleno = 370 (0x172), region = 32  ;;  %627 = vmatprep.subr.bf16.mxu1 (!%p203_p3), %v1123_v0  ;;  %303 = vst [vmem:[#allocation2] sm:$0x3] (!%p203_p3), %v1124_v39  ;;  %304 = vst [vmem:[#allocation3] sm:$0xff] (!%p203_p3), %v1125_v40  ;;  %v364_v41 = vlaneseq (!%p203_p3)  ;;  %s1239_s30 = ssub.s32 (!%p203_p3), 1, %s990_s29 }
   0x8   : > { %307 = vst [vmem:[#allocation3 + $0x18] sm:$0xff] (!%p203_p3), %v1125_v40  ;;  %308 = vst [vmem:[#allocation4] sm:$0xff] (!%p203_p3), %v1124_v39  ;;  %s991_s4 = sshll.u32 (!%p203_p3), %s1239_s30, 1  ;;  %s869_s5 = smul.u32 (!%p203_p3), 14, %s1113_s12 }
   0x9   : > { %311 = vst [vmem:[#allocation4 + $0x18] sm:$0xff] (!%p203_p3), %v1124_v39  ;;  %v365_v42 = vshrl.u32 (!%p203_p3), %v364_v41, 7  ;;  %s1243_s6 = ssub.s32 (!%p203_p3), 8, %s991_s4  ;;  %s992_s9 = sshll.u32 (!%p203_p3), %s1239_s30, 2 }
   0xa   : > { %s873_s7 = scalar_lea.vmem (!%p203_p3), [#allocation3], %s869_s5  ;;  %s720_s8 = scalar_lea.vmem (!%p203_p3), [#allocation3], %s1243_s6 }
   0xb   : > { %v366_v43 = vsub.s32 (!%p203_p3), 0, %v365_v42  ;;  %v370_v45 = vsub.s32 (!%p203_p3), 1, %v365_v42  ;;  %v374_v58 = vsub.s32 (!%p203_p3), 2, %v365_v42  ;;  %s870_s10 = scalar_lea.vmem (!%p203_p3), [#allocation4], %s869_s5  ;;  %s1247_s11 = ssub.s32 (!%p203_p3), 8, %s992_s9 }
   0xc   : > { %s993_s19 = sshll.u32 (!%p203_p3), %s1239_s30, 3  ;;  %s723_s20 = scalar_lea.vmem (!%p203_p3), [#allocation4], %s1243_s6 }
   0xd   : > { %s745_s23 = scalar_lea.vmem (!%p203_p3), [#allocation4], %s1247_s11 }
   0xe   : > { %s1169_s16 = scalar_select %p257_p4, %s1113_s12, 1 }
  0x10   : > { %s999_s17 = smul.u32 288, %s1169_s16  ;;  %s997_s18 = sshll.u32 %s1169_s16, 4 }
  0x11   : > { %s1178_s21 = scalar_lea.vmem %s1272_s0, %s997_s18  ;;  %s1000_s25 = smul.u32 3, %s1169_s16 }
  0x12   : > { %s1183_s24 = scalar_lea.vmem %s1273_s1, %s999_s17  ;;  %v1066_v12 = vld [vmem:[%s1178_s21 + $0x4] ss:$8 sps:$4 sm:$0xff]   ;;  %v1064_v34 = vld [vmem:[%s1178_s21] ss:$8 sps:$4 sm:$0xff]   ;;  %s742_s17 = scalar_lea.vmem [#allocation3], %s1247_s11 }
  0x13   : > { %v1028_v1 = vld [vmem:[%s1183_s24 + $0x4] ss:$12 sps:$4 sm:$0xff]   ;;  %v1030_v2 = vld [vmem:[%s1183_s24] ss:$12 sps:$4 sm:$0xff]   ;;  %v1031_v3 = vld [vmem:[%s1183_s24 + $0x1c] ss:$12 sps:$4 sm:$0xff]   ;;  %981 = vmatprep.mubr.msk.bf16.mxu0 %vm580_vm0, %v1066_v12  ;;  %982 = vmatprep.mubr.msk.bf16.mxu1 %vm580_vm0, %v1066_v12  ;;  %s279_s28 = scalar_lea.vmem %s1274_s2, %s1000_s25 }
  0x14   : > { %584 = vmatprep.subr.bf16.mxu0 %v1028_v1  ;;  %v1033_v4 = vld [vmem:[%s1183_s24 + $0x18] ss:$12 sps:$4 sm:$0xff]   ;;  %v1034_v5 = vld [vmem:[%s1183_s24 + $0x34] ss:$12 sps:$4 sm:$0xff]   ;;  %v1036_v6 = vld [vmem:[%s1183_s24 + $0x30] ss:$12 sps:$4 sm:$0xff]  }
  0x15   : > { %585 = vmatpush1.bf16.msra.mxu0 %v1030_v2  ;;  %v1037_v7 = vld [vmem:[%s1183_s24 + $0x4c] ss:$12 sps:$4 sm:$0xff]   ;;  %v1039_v8 = vld [vmem:[%s1183_s24 + $0x48] ss:$12 sps:$4 sm:$0xff]   ;;  %v1040_v9 = vld [vmem:[%s1183_s24 + $0x64] ss:$12 sps:$4 sm:$0xff]  }
  0x16   : > { %586 = vmatprep.subr.bf16.mxu0 %v1031_v3  ;;  %v1042_v10 = vld [vmem:[%s1183_s24 + $0x60] ss:$12 sps:$4 sm:$0xff]   ;;  %v1043_v11 = vld [vmem:[%s1183_s24 + $0x7c] ss:$12 sps:$4 sm:$0xff]   ;;  %v1045_v14 = vld [vmem:[%s1183_s24 + $0x78] ss:$12 sps:$4 sm:$0xff]  }
  0x17   : > { %v1067_v13 = vld [vmem:[%s1183_s24 + $0x8] ss:$12 sps:$4 sm:$0xff]   ;;  %v1068_v15 = vld [vmem:[%s1183_s24 + $0x20] ss:$12 sps:$4 sm:$0xff]   ;;  %v1048_v17 = vld [vmem:[%s1183_s24 + $0x90] ss:$12 sps:$4 sm:$0xff]  }
  0x18   : > { %628 = vmatpush1.bf16.msra.mxu1 %v1067_v13  ;;  %v1046_v16 = vld [vmem:[%s1183_s24 + $0x94] ss:$12 sps:$4 sm:$0xff]   ;;  %v1069_v18 = vld [vmem:[%s1183_s24 + $0x38] ss:$12 sps:$4 sm:$0xff]   ;;  %v1070_v21 = vld [vmem:[%s1183_s24 + $0x50] ss:$12 sps:$4 sm:$0xff]  }
  0x19   : > { %587 = vmatpush1.bf16.msra.mxu0 %v1033_v4  ;;  %629 = vmatprep.subr.bf16.mxu1 %v1123_v0  ;;  %v1049_v19 = vld [vmem:[%s1183_s24 + $0xac] ss:$12 sps:$4 sm:$0xff]   ;;  %v1051_v20 = vld [vmem:[%s1183_s24 + $0xa8] ss:$12 sps:$4 sm:$0xff]   ;;  %v1052_v22 = vld [vmem:[%s1183_s24 + $0xc4] ss:$12 sps:$4 sm:$0xff]  }
  0x1a   : > { %588 = vmatprep.subr.bf16.mxu0 %v1034_v5  ;;  %v1054_v23 = vld [vmem:[%s1183_s24 + $0xc0] ss:$12 sps:$4 sm:$0xff]   ;;  %v1071_v24 = vld [vmem:[%s1183_s24 + $0x68] ss:$12 sps:$4 sm:$0xff]   ;;  %v1057_v26 = vld [vmem:[%s1183_s24 + $0xd8] ss:$12 sps:$4 sm:$0xff]  }
  0x1b   : > { %v1055_v25 = vld [vmem:[%s1183_s24 + $0xdc] ss:$12 sps:$4 sm:$0xff]   ;;  %v1072_v27 = vld [vmem:[%s1183_s24 + $0x80] ss:$12 sps:$4 sm:$0xff]   ;;  %v1073_v30 = vld [vmem:[%s1183_s24 + $0x98] ss:$12 sps:$4 sm:$0xff]  }
  0x1c   : > { %630 = vmatpush1.bf16.msra.mxu1 %v1068_v15  ;;  %v1058_v28 = vld [vmem:[%s1183_s24 + $0xf4] ss:$12 sps:$4 sm:$0xff]   ;;  %v1060_v29 = vld [vmem:[%s1183_s24 + $0xf0] ss:$12 sps:$4 sm:$0xff]   ;;  %v1061_v31 = vld [vmem:[%s1183_s24 + $0x10c] ss:$12 sps:$4 sm:$0xff]  }
  0x1d   : > { %589 = vmatpush1.bf16.msra.mxu0 %v1036_v6  ;;  %631 = vmatprep.subr.bf16.mxu1 %v1123_v0  ;;  %v1063_v32 = vld [vmem:[%s1183_s24 + $0x108] ss:$12 sps:$4 sm:$0xff]   ;;  %v1074_v33 = vld [vmem:[%s1183_s24 + $0xb0] ss:$12 sps:$4 sm:$0xff]   ;;  %v1076_v36 = vld [vmem:[%s1183_s24 + $0xe0] ss:$12 sps:$4 sm:$0xff]  }
  0x1e   : > { %590 = vmatprep.subr.bf16.mxu0 %v1037_v7  ;;  %v1075_v35 = vld [vmem:[%s1183_s24 + $0xc8] ss:$12 sps:$4 sm:$0xff]   ;;  %v1077_v37 = vld [vmem:[%s1183_s24 + $0xf8] ss:$12 sps:$4 sm:$0xff]   ;;  %v1078_v38 = vld [vmem:[%s1183_s24 + $0x110] ss:$12 sps:$4 sm:$0xff]  }
  0x1f   : > { %v362_v44 = vld [vmem:[%s279_s28] sm:$0x7]  ;;  %s1252_s21 = ssub.s32 8, %s993_s19  ;;  %s786_s25 = ssub.s32 1, %s1113_s12 }
  0x20   : > { %632 = vmatpush1.bf16.msra.mxu1 %v1069_v18  ;;  %v367_v46 = vrot.slane %v362_v44, %v366_v43  ;;  %v371_v47 = vrot.slane %v362_v44, %v370_v45  ;;  %v375_v59 = vrot.slane %v362_v44, %v374_v58  ;;  %s764_s22 = scalar_lea.vmem [#allocation3], %s1252_s21  ;;  %s767_s24 = scalar_lea.vmem [#allocation4], %s1252_s21 }
  0x21   : > { %591 = vmatpush1.bf16.msra.mxu0 %v1039_v8  ;;  %633 = vmatprep.subr.bf16.mxu1 %v1123_v0  ;;  %s292_s28 = scalar_lea.vmem %s1275_s3, %s997_s18  ;;  %s881_s29 = smul.u32 14, %s786_s25 }
  0x22   : > { %592 = vmatprep.subr.bf16.mxu0 %v1040_v9 }
  0x23   : > { %s882_s30 = scalar_lea.vmem [#allocation4], %s881_s29 }
  0x24   : > { %634 = vmatpush1.bf16.msra.mxu1 %v1070_v21 }
  0x25   : > { %593 = vmatpush1.bf16.msra.mxu0 %v1042_v10  ;;  %635 = vmatprep.subr.bf16.mxu1 %v1123_v0 }
  0x26   : > { %594 = vmatprep.subr.bf16.mxu0 %v1043_v11 }
  0x28   : > { %636 = vmatpush1.bf16.msra.mxu1 %v1071_v24 }
  0x29   : > { %595 = vmatpush1.bf16.msra.mxu0 %v1045_v14  ;;  %637 = vmatprep.subr.bf16.mxu1 %v1123_v0  ;;  %v704_v14 = vld [vmem:[#allocation2] sm:$0x3] }
  0x2a   : > { %596 = vmatprep.subr.bf16.mxu0 %v1046_v16 }
  0x2c   : > { %638 = vmatpush1.bf16.msra.mxu1 %v1072_v27 }
  0x2d   : > { %597 = vmatpush1.bf16.msra.mxu0 %v1048_v17  ;;  %639 = vmatprep.subr.bf16.mxu1 %v1123_v0 }
  0x2e   : > { %598 = vmatprep.subr.bf16.mxu0 %v1049_v19 }
  0x30   : > { %640 = vmatpush1.bf16.msra.mxu1 %v1073_v30 }
  0x31   : > { %599 = vmatpush1.bf16.msra.mxu0 %v1051_v20  ;;  %641 = vmatprep.subr.bf16.mxu1 %v1123_v0 }
  0x32   : > { %600 = vmatprep.subr.bf16.mxu0 %v1052_v22 }
  0x34   : > { %642 = vmatpush1.bf16.msra.mxu1 %v1074_v33 }
  0x35   : > { %601 = vmatpush1.bf16.msra.mxu0 %v1054_v23  ;;  %643 = vmatprep.subr.bf16.mxu1 %v1123_v0 }
  0x36   : > { %602 = vmatprep.subr.bf16.mxu0 %v1055_v25 }
  0x38   : > { %644 = vmatpush1.bf16.msra.mxu1 %v1075_v35 }
  0x39   : > { %603 = vmatpush1.bf16.msra.mxu0 %v1057_v26  ;;  %645 = vmatprep.subr.bf16.mxu1 %v1123_v0 }
  0x3a   : > { %604 = vmatprep.subr.bf16.mxu0 %v1058_v28 }
  0x3c   : > { %646 = vmatpush1.bf16.msra.mxu1 %v1076_v36 }
  0x3d   : > { %605 = vmatpush1.bf16.msra.mxu0 %v1060_v29  ;;  %647 = vmatprep.subr.bf16.mxu1 %v1123_v0 }
  0x3e   : > { %606 = vmatprep.subr.bf16.mxu0 %v1061_v31 }
  0x40   : > { %648 = vmatpush1.bf16.msra.mxu1 %v1077_v37 }
  0x41   : > { %607 = vmatpush1.bf16.msra.mxu0 %v1063_v32  ;;  %649 = vmatprep.subr.bf16.mxu1 %v1123_v0 }
  0x44   : > { %617 = vmatmul.mubr.bf16.vlgmr.msra.gmra.mrb[0].mxu0 %v1064_v34  ;;  %650 = vmatpush1.bf16.msra.mxu1 %v1078_v38 }
  0x47   : > { %660 = vmatmul.mubr.bf16.vlgmr.msra.gmra.mrb[0].mxu1 %v1064_v34 }
 0x117   : > { %v618_v48 = vpop.f32.mrb[0].mxu0 }
 0x118   : > { %v619_v49 = vadd.f32 %v618_v48, %v367_v46  ;;  %v620_v50 = vpop.f32.mrb[1].mxu0 }
 0x119   : > { %v621_v51 = vadd.f32 %v620_v50, %v371_v47  ;;  %v622_v52 = vpop.f32.mrb[2].mxu0 }
 0x11a   : > { %v623_v53 = vadd.f32 %v622_v52, %v367_v46  ;;  %v624_v54 = vpop.f32.mrb[3].mxu0  ;;  %v661_v61 = vpop.f32.mrb[0].mxu1 }
 0x11b   : > { %v983_v55 = vmul.f32 -1.442695, %v621_v51  ;;  %v625_v56 = vadd.f32 %v624_v54, %v371_v47  ;;  %v662_v63 = vadd.f32 %v661_v61, %v375_v59  ;;  %v663_v0 = vpop.f32.mrb[1].mxu1 }
 0x11c   : > { %v664_v2 = vpop.f32.mrb[2].mxu1 }
 0x11d   : > { %1079 = vpow2.f32 %v983_v55  ;;  %v984_v57 = vmul.f32 -1.442695, %v625_v56  ;;  %v665_v4 = vadd.f32 %v664_v2, %v375_v59  ;;  %v666_v5 = vpop.f32.mrb[3].mxu1  ;;  %v985_v23 = vmul.f32 -1.442695, %v662_v63 }
 0x11f   : > { %1081 = vpow2.f32 %v984_v57  ;;  %v986_v26 = vmul.f32 -1.442695, %v665_v4 }
 0x127   : > { %v1080_v60 = vpop.eup %1079 }
 0x128   : > { %v676_v62 = vadd.f32 1.0, %v1080_v60 }
 0x129   : > { %v1082_v1 = vpop.eup %1081 }
 0x12a   : > { %1083 = vrcp.f32 %v676_v62  ;;  %v677_v3 = vadd.f32 1.0, %v1082_v1 }
 0x12b   : > { %1085 = vtanh.f32 %v619_v49 }
 0x12c   : > { %1087 = vrcp.f32 %v677_v3 }
 0x12d   : > { %1089 = vtanh.f32 %v623_v53 }
 0x12e   : > { %1091 = vpow2.f32 %v985_v23 }
 0x12f   : > { %1093 = vpow2.f32 %v986_v26 }
 0x134   : > { %v1084_v6 = vpop.eup %1083 }
 0x135   : > { %v1086_v7 = vpop.eup %1085  ;;  %694 = vst [vmem:[#allocation3 + $0x8] sm:$0xff] %v1084_v6  ;;  %v696_v8 = vsub.f32 1.0, %v1084_v6 }
 0x136   : > { %v1088_v9 = vpop.eup %1087 }
 0x137   : > { %v698_v10 = vmul.f32 %v1086_v7, %v696_v8  ;;  %695 = vst [vmem:[#allocation3 + $0x10] sm:$0xff] %v1088_v9  ;;  %v697_v11 = vsub.f32 1.0, %v1088_v9  ;;  %v1090_v12 = vpop.eup %1089 }
 0x138   : > { %v1092_v41 = vpop.eup %1091 }
 0x139   : > { %700 = vst [vmem:[#allocation4 + $0x8] sm:$0xff] %v698_v10  ;;  %v699_v13 = vmul.f32 %v1090_v12, %v697_v11  ;;  %v1094_v42 = vpop.eup %1093  ;;  %v688_v43 = vadd.f32 1.0, %v1092_v41 }
 0x13a   : > { %v689_v46 = vadd.f32 1.0, %v1094_v42 }
 0x13b   : > { %701 = vst [vmem:[#allocation4 + $0x10] sm:$0xff] %v699_v13  ;;  %1095 = vrcp.f32 %v688_v43 }
 0x13c   : > { %1097 = vrcp.f32 %v689_v46 }
 0x13e   : > { %v988_v15 = vld [vmem:[%s873_s7 + $0x8] sm:$0x3]  ;;  %v721_v16 = vld [vmem:[%s720_s8] sm:$0xff] }
 0x13f   : > { %v722_v17 = vld [vmem:[%s720_s8 + $0x8] sm:$0xff]  ;;  %v726_v18 = vmul.f32 %v1084_v6, %v721_v16  ;;  %v709_v20 = vmul.f32 %v988_v15, %v704_v14 }
 0x140   : > { %v727_v19 = vmul.f32 %v1088_v9, %v722_v17 }
 0x141   : > { %728 = vst [vmem:[#allocation3 + $0x8] sm:$0xff] %v726_v18 }
 0x142   : > { %729 = vst [vmem:[#allocation3 + $0x10] sm:$0xff] %v727_v19  ;;  %v987_v21 = vld [vmem:[%s870_s10 + $0x8] sm:$0x3] }
 0x143   : > { %v710_v22 = vadd.f32 %v987_v21, %v709_v20 }
 0x145   : > { %989 = vst [vmem:[%s870_s10 + $0x8] sm:$0x3] %v710_v22  ;;  %v1096_v53 = vpop.eup %1095 }
 0x146   : > { %v1098_v56 = vpop.eup %1097 }
 0x149   : > { %v743_v24 = vld [vmem:[%s742_s17] sm:$0xff]  ;;  %v744_v25 = vld [vmem:[%s742_s17 + $0x8] sm:$0xff] }
 0x14a   : > { %v748_v27 = vmul.f32 %v743_v24, %v726_v18  ;;  %v749_v28 = vmul.f32 %v744_v25, %v727_v19 }
 0x14c   : > { %750 = vst [vmem:[#allocation3 + $0x8] sm:$0xff] %v748_v27  ;;  %751 = vst [vmem:[#allocation3 + $0x10] sm:$0xff] %v749_v28  ;;  %v724_v29 = vld [vmem:[%s723_s20] sm:$0xff]  ;;  %v725_v30 = vld [vmem:[%s723_s20 + $0x8] sm:$0xff] }
 0x14d   : > { %v730_v31 = vmul.f32 %v1084_v6, %v724_v29  ;;  %v716_v32 = vld [vmem:[#allocation4 + $0x8] sm:$0xff]  ;;  %v731_v33 = vmul.f32 %v1088_v9, %v725_v30  ;;  %v717_v34 = vld [vmem:[#allocation4 + $0x10] sm:$0xff] }
 0x14f   : > { %v732_v35 = vadd.f32 %v730_v31, %v716_v32  ;;  %v733_v36 = vadd.f32 %v731_v33, %v717_v34 }
 0x151   : > { %734 = vst [vmem:[#allocation4 + $0x8] sm:$0xff] %v732_v35  ;;  %735 = vst [vmem:[#allocation4 + $0x10] sm:$0xff] %v733_v36 }
 0x153   : > { %v765_v37 = vld [vmem:[%s764_s22] sm:$0xff]  ;;  %v766_v38 = vld [vmem:[%s764_s22 + $0x8] sm:$0xff] }
 0x154   : > { %v770_v39 = vmul.f32 %v765_v37, %v748_v27  ;;  %v771_v40 = vmul.f32 %v766_v38, %v749_v28 }
 0x156   : > { %772 = vst [vmem:[#allocation3 + $0x8] sm:$0xff] %v770_v39  ;;  %773 = vst [vmem:[#allocation3 + $0x10] sm:$0xff] %v771_v40 }
 0x158   : > { %v746_v44 = vld [vmem:[%s745_s23] sm:$0xff]  ;;  %v747_v45 = vld [vmem:[%s745_s23 + $0x8] sm:$0xff] }
 0x159   : > { %v752_v47 = vmul.f32 %v746_v44, %v726_v18  ;;  %v753_v48 = vmul.f32 %v747_v45, %v727_v19 }
 0x15b   : > { %v754_v49 = vadd.f32 %v752_v47, %v732_v35  ;;  %v755_v50 = vadd.f32 %v753_v48, %v733_v36 }
 0x15d   : > { %756 = vst [vmem:[#allocation4 + $0x8] sm:$0xff] %v754_v49  ;;  %757 = vst [vmem:[#allocation4 + $0x10] sm:$0xff] %v755_v50 }
 0x164   : > { %v768_v51 = vld [vmem:[%s767_s24] sm:$0xff]  ;;  %v769_v52 = vld [vmem:[%s767_s24 + $0x8] sm:$0xff] }
 0x165   : > { %v774_v54 = vmul.f32 %v768_v51, %v748_v27  ;;  %v775_v55 = vmul.f32 %v769_v52, %v749_v28 }
 0x167   : > { %v776_v57 = vadd.f32 %v774_v54, %v754_v49  ;;  %v777_v58 = vadd.f32 %v775_v55, %v755_v50 }
 0x169   : > { %778 = vst [vmem:[#allocation4 + $0x8] sm:$0xff] %v776_v57  ;;  %779 = vst [vmem:[#allocation4 + $0x10] sm:$0xff] %v777_v58  ;;  %v782_v59 = vmul.f32 %v1096_v53, %v776_v57  ;;  %v783_v60 = vmul.f32 %v1098_v56, %v777_v58 }
 0x16b   : > { %784 = vst [vmem:[%s292_s28] sm:$0xff] %v782_v59  ;;  %785 = vst [vmem:[%s292_s28 + $0x8] sm:$0xff] %v783_v60 }
 0x170   : > { %v994_v61 = vld [vmem:[%s882_s30 + $0x8] sm:$0x3] }
 0x171   : > { %791 = vst [vmem:[#allocation2] sm:$0x3] %v994_v61 }
 0x172 PF: > { %s13_s14 = sadd.s32 1, %s1121_s14   ;;  %s1276_s12 = smov %s1117_s13 }
 0x173   : > { %p10_p5 = scmp.ge.s32.totalorder %s13_s14, 4   ;;  %s1277_s13 = smov %s1279_s15 }
 0x175   :  { %12 = sbr.rel (!%p10_p5) target bundleno = 2 (0x2), region = 81 }

</bundles_post_ra>
